<compile_context>
chip_gen: v6e
topology: v6e:2x2x1
jax: 0.10.0
libtpu: 0.0.40
codegen_flags: <defaults>
</compile_context>

<pallas_src>
import numpy as np
import jax
import jax.numpy as jnp
from jax.experimental import pallas as pl
from jax.experimental.pallas import tpu as pltpu

# Module hyperparameters (CNN.__init__ defaults)
C, H, W = 1, 6, 10
OC, KH, KW = 3, 3, 5
OH, OW = H - KH + 1, W - KW + 1          # 4, 6   (valid conv, stride 1)
PH, PW = OH // 2, OW // 2                # 2, 3   (MaxPool2d(2), stride 2)
NFEAT = OC * PH * PW                     # 18 == cnn_number_of_features
_LANE = 128


def _round_up(x, m):
    return ((x + m - 1) // m) * m


def _cnn_kernel(x_ref, w_ref, b_ref, val_ref, idx_ref):
    # x_ref   : (C, H, W, TB)   VMEM  (batch on the lane axis)
    # w_ref   : (OC*C*KH*KW,)   SMEM  flattened conv weight (scalar reads)
    # b_ref   : (OC,)           SMEM
    # val_ref : (NFEAT, TB)     VMEM  pooled max values, feature-major
    # idx_ref : (NFEAT, TB)     VMEM  argmax indices into flattened (OH*OW)
    tb = x_ref.shape[-1]
    x = x_ref[...]                                   # already float32

    vals = []
    idxs = []
    for oc in range(OC):
        # ---- Conv2d (cross-correlation like PyTorch), bias hoisted --------
        acc = jnp.zeros((OH, OW, tb), jnp.float32) + b_ref[oc]
        for c in range(C):
            for kh in range(KH):
                for kw in range(KW):
                    wv = w_ref[((oc * C + c) * KH + kh) * KW + kw]
                    acc = acc + x[c, kh:kh + OH, kw:kw + OW, :] * wv

        # ---- fused MaxPool2d(2, return_indices) on lane-dense rows --------
        for ph in range(PH):
            for pw in range(PW):
                i0, j0 = 2 * ph, 2 * pw
                cands = (
                    (acc[i0, j0:j0 + 1, :], i0 * OW + j0),
                    (acc[i0, j0 + 1:j0 + 2, :], i0 * OW + j0 + 1),
                    (acc[i0 + 1, j0:j0 + 1, :], (i0 + 1) * OW + j0),
                    (acc[i0 + 1, j0 + 1:j0 + 2, :], (i0 + 1) * OW + j0 + 1),
                )
                best_v, f0 = cands[0]
                best_i = jnp.full((1, tb), f0, jnp.int32)
                for v, f in cands[1:]:
                    take = v > best_v       # strict '>' keeps earliest index
                    best_i = jnp.where(take, jnp.int32(f), best_i)
                    best_v = jnp.where(take, v, best_v)
                vals.append(best_v)
                idxs.append(best_i)

    # single coalesced (NFEAT, TB) store per output
    val_ref[...] = jnp.concatenate(vals, axis=0)
    idx_ref[...] = jnp.concatenate(idxs, axis=0)


def cnn_forward(x, weight, bias, *, block_b=2048):
    """Forward pass of the CNN module.

    x:      (B, C, H, W) float32
    weight: (OC, C, KH, KW) float32
    bias:   (OC,) float32
    returns (cnn_out (B, 18) float32, mp_indices (B, OC, PH, PW) int32)
    """
    B, Ci, Hi, Wi = x.shape
    assert (Ci, Hi, Wi) == (C, H, W), "wrong size for CNN input"

    # Batch goes on the lane axis: (B, C, H, W) -> (C, H, W, B), padded so
    # the batch is a multiple of the batch block (tail block handled by pad).
    # TODO(synk): if the consumer can accept feature-major (NFEAT, B) outputs
    # / channel-last inputs, these wrapper transposes could be dropped to
    # roughly halve end-to-end HBM traffic.
    tb = min(block_b, _round_up(B, _LANE))
    bp = _round_up(B, tb)
    x_t = jnp.transpose(x.astype(jnp.float32), (1, 2, 3, 0))
    if bp != B:
        x_t = jnp.pad(x_t, ((0, 0), (0, 0), (0, 0), (0, bp - B)))

    w_flat = weight.reshape(-1).astype(jnp.float32)
    b = bias.astype(jnp.float32)

    vals, idxs = pl.pallas_call(
        _cnn_kernel,
        out_shape=(
            jax.ShapeDtypeStruct((NFEAT, bp), jnp.float32),
            jax.ShapeDtypeStruct((NFEAT, bp), jnp.int32),
        ),
        grid=(bp // tb,),
        in_specs=[
            pl.BlockSpec((C, H, W, tb), lambda i: (0, 0, 0, i)),
            pl.BlockSpec(memory_space=pltpu.MemorySpace.SMEM),
            pl.BlockSpec(memory_space=pltpu.MemorySpace.SMEM),
        ],
        out_specs=(
            pl.BlockSpec((NFEAT, tb), lambda i: (0, i)),
            pl.BlockSpec((NFEAT, tb), lambda i: (0, i)),
        ),
        compiler_params=pltpu.CompilerParams(
            dimension_semantics=("parallel",)),
        cost_estimate=pl.CostEstimate(
            flops=2 * bp * OC * C * KH * KW * OH * OW,
            transcendentals=0,
            bytes_accessed=bp * (C * H * W * 4 + 2 * NFEAT * 4),
        ),
    )(x_t, w_flat, b)

    cnn_out = vals[:, :B].T                              # (B, NFEAT) == .view(-1, 18)
    # TODO(synk): PyTorch mp_indices are int64; int32 used here (TPU-friendly).
    mp_indices = idxs[:, :B].T.reshape(B, OC, PH, PW)
    return cnn_out, mp_indices


if __name__ == "__main__":
    key = jax.random.PRNGKey(0)
    kx, kw, kb = jax.random.split(key, 3)
    B = 2
    x = jax.random.normal(kx, (B, C, H, W), jnp.float32)
    weight = jax.random.normal(kw, (OC, C, KH, KW), jnp.float32) / np.sqrt(C * KH * KW)
    bias = 0.1 * jax.random.normal(kb, (OC,), jnp.float32)

    cnn_out, mp_idx = jax.block_until_ready(cnn_forward(x, weight, bias))

    # ---- pure-numpy reference (exact PyTorch semantics) --------------------
    xn, wn, bn = np.asarray(x), np.asarray(weight), np.asarray(bias)
    conv = np.zeros((B, OC, OH, OW), np.float32)
    for b_ in range(B):
        for oc in range(OC):
            for i in range(OH):
                for j in range(OW):
                    conv[b_, oc, i, j] = bn[oc] + np.sum(
                        xn[b_, :, i:i + KH, j:j + KW] * wn[oc])
    pool = np.zeros((B, OC, PH, PW), np.float32)
    pidx = np.zeros((B, OC, PH, PW), np.int64)
    for b_ in range(B):
        for oc in range(OC):
            for ph in range(PH):
                for pw in range(PW):
                    wdw = conv[b_, oc, 2 * ph:2 * ph + 2, 2 * pw:2 * pw + 2]
                    a = int(np.argmax(wdw))
                    pool[b_, oc, ph, pw] = wdw.flat[a]
                    pidx[b_, oc, ph, pw] = (2 * ph + a // 2) * OW + (2 * pw + a % 2)
    ref_out = pool.reshape(B, NFEAT)

    assert np.allclose(np.asarray(cnn_out), ref_out, atol=1e-5), "value mismatch"
    assert np.array_equal(np.asarray(mp_idx), pidx.astype(np.int32)), "index mismatch"
    print("KERNEL_OK")
</pallas_src>

<mosaic_0001>
module attributes {stable_mosaic.version = 11 : i64} {
  func.func @_cnn_kernel(%arg0: i32, %arg1: memref<1x6x10x128xf32, #tpu.memory_space<vmem>>, %arg2: memref<45xf32, #tpu.memory_space<smem>>, %arg3: memref<3xf32, #tpu.memory_space<smem>>, %arg4: memref<18x128xf32, #tpu.memory_space<vmem>>, %arg5: memref<18x128xi32, #tpu.memory_space<vmem>>) attributes {dimension_semantics = [#tpu.dimension_semantics<parallel>], iteration_bounds = array<i64: 1>, scalar_prefetch = 0 : i64, scratch_operands = 0 : i64, tpu.core_type = #tpu.core_type<tc>, window_params = [{transform_indices = @transform_0, window_bounds = array<i64: 1, 6, 10, 128>}, {transform_indices = @transform_1, window_bounds = array<i64: 45>}, {transform_indices = @transform_2, window_bounds = array<i64: 3>}, {transform_indices = @transform_3, window_bounds = array<i64: 18, 128>}, {transform_indices = @transform_4, window_bounds = array<i64: 18, 128>}]} {
    %c0 = arith.constant 0 : index
    %c0_0 = arith.constant 0 : index
    %c0_1 = arith.constant 0 : index
    %c0_2 = arith.constant 0 : index
    %0 = vector.load %arg1[%c0, %c0_0, %c0_1, %c0_2] : memref<1x6x10x128xf32, #tpu.memory_space<vmem>>, vector<1x6x10x128xf32>
    %cst = arith.constant 0.000000e+00 : f32
    %1 = vector.broadcast %cst : f32 to vector<4x6x128xf32>
    %c0_3 = arith.constant 0 : index
    %2 = memref.load %arg3[%c0_3] : memref<3xf32, #tpu.memory_space<smem>>
    %3 = vector.broadcast %2 : f32 to vector<4x6x128xf32>
    %4 = arith.addf %1, %3 : vector<4x6x128xf32>
    %c0_4 = arith.constant 0 : index
    %5 = memref.load %arg2[%c0_4] : memref<45xf32, #tpu.memory_space<smem>>
    %6 = vector.extract_strided_slice %0 {offsets = [0, 0, 0, 0], sizes = [1, 4, 6, 128], strides = [1, 1, 1, 1]} : vector<1x6x10x128xf32> to vector<1x4x6x128xf32>
    %7 = vector.shape_cast %6 : vector<1x4x6x128xf32> to vector<4x6x128xf32>
    %8 = vector.broadcast %5 : f32 to vector<4x6x128xf32>
    %9 = arith.mulf %7, %8 : vector<4x6x128xf32>
    %10 = arith.addf %4, %9 : vector<4x6x128xf32>
    %c1 = arith.constant 1 : index
    %11 = memref.load %arg2[%c1] : memref<45xf32, #tpu.memory_space<smem>>
    %12 = vector.extract_strided_slice %0 {offsets = [0, 0, 1, 0], sizes = [1, 4, 6, 128], strides = [1, 1, 1, 1]} : vector<1x6x10x128xf32> to vector<1x4x6x128xf32>
    %13 = vector.shape_cast %12 : vector<1x4x6x128xf32> to vector<4x6x128xf32>
    %14 = vector.broadcast %11 : f32 to vector<4x6x128xf32>
    %15 = arith.mulf %13, %14 : vector<4x6x128xf32>
    %16 = arith.addf %10, %15 : vector<4x6x128xf32>
    %c2 = arith.constant 2 : index
    %17 = memref.load %arg2[%c2] : memref<45xf32, #tpu.memory_space<smem>>
    %18 = vector.extract_strided_slice %0 {offsets = [0, 0, 2, 0], sizes = [1, 4, 6, 128], strides = [1, 1, 1, 1]} : vector<1x6x10x128xf32> to vector<1x4x6x128xf32>
    %19 = vector.shape_cast %18 : vector<1x4x6x128xf32> to vector<4x6x128xf32>
    %20 = vector.broadcast %17 : f32 to vector<4x6x128xf32>
    %21 = arith.mulf %19, %20 : vector<4x6x128xf32>
    %22 = arith.addf %16, %21 : vector<4x6x128xf32>
    %c3 = arith.constant 3 : index
    %23 = memref.load %arg2[%c3] : memref<45xf32, #tpu.memory_space<smem>>
    %24 = vector.extract_strided_slice %0 {offsets = [0, 0, 3, 0], sizes = [1, 4, 6, 128], strides = [1, 1, 1, 1]} : vector<1x6x10x128xf32> to vector<1x4x6x128xf32>
    %25 = vector.shape_cast %24 : vector<1x4x6x128xf32> to vector<4x6x128xf32>
    %26 = vector.broadcast %23 : f32 to vector<4x6x128xf32>
    %27 = arith.mulf %25, %26 : vector<4x6x128xf32>
    %28 = arith.addf %22, %27 : vector<4x6x128xf32>
    %c4 = arith.constant 4 : index
    %29 = memref.load %arg2[%c4] : memref<45xf32, #tpu.memory_space<smem>>
    %30 = vector.extract_strided_slice %0 {offsets = [0, 0, 4, 0], sizes = [1, 4, 6, 128], strides = [1, 1, 1, 1]} : vector<1x6x10x128xf32> to vector<1x4x6x128xf32>
    %31 = vector.shape_cast %30 : vector<1x4x6x128xf32> to vector<4x6x128xf32>
    %32 = vector.broadcast %29 : f32 to vector<4x6x128xf32>
    %33 = arith.mulf %31, %32 : vector<4x6x128xf32>
    %34 = arith.addf %28, %33 : vector<4x6x128xf32>
    %c5 = arith.constant 5 : index
    %35 = memref.load %arg2[%c5] : memref<45xf32, #tpu.memory_space<smem>>
    %36 = vector.extract_strided_slice %0 {offsets = [0, 1, 0, 0], sizes = [1, 4, 6, 128], strides = [1, 1, 1, 1]} : vector<1x6x10x128xf32> to vector<1x4x6x128xf32>
    %37 = vector.shape_cast %36 : vector<1x4x6x128xf32> to vector<4x6x128xf32>
    %38 = vector.broadcast %35 : f32 to vector<4x6x128xf32>
    %39 = arith.mulf %37, %38 : vector<4x6x128xf32>
    %40 = arith.addf %34, %39 : vector<4x6x128xf32>
    %c6 = arith.constant 6 : index
    %41 = memref.load %arg2[%c6] : memref<45xf32, #tpu.memory_space<smem>>
    %42 = vector.extract_strided_slice %0 {offsets = [0, 1, 1, 0], sizes = [1, 4, 6, 128], strides = [1, 1, 1, 1]} : vector<1x6x10x128xf32> to vector<1x4x6x128xf32>
    %43 = vector.shape_cast %42 : vector<1x4x6x128xf32> to vector<4x6x128xf32>
    %44 = vector.broadcast %41 : f32 to vector<4x6x128xf32>
    %45 = arith.mulf %43, %44 : vector<4x6x128xf32>
    %46 = arith.addf %40, %45 : vector<4x6x128xf32>
    %c7 = arith.constant 7 : index
    %47 = memref.load %arg2[%c7] : memref<45xf32, #tpu.memory_space<smem>>
    %48 = vector.extract_strided_slice %0 {offsets = [0, 1, 2, 0], sizes = [1, 4, 6, 128], strides = [1, 1, 1, 1]} : vector<1x6x10x128xf32> to vector<1x4x6x128xf32>
    %49 = vector.shape_cast %48 : vector<1x4x6x128xf32> to vector<4x6x128xf32>
    %50 = vector.broadcast %47 : f32 to vector<4x6x128xf32>
    %51 = arith.mulf %49, %50 : vector<4x6x128xf32>
    %52 = arith.addf %46, %51 : vector<4x6x128xf32>
    %c8 = arith.constant 8 : index
    %53 = memref.load %arg2[%c8] : memref<45xf32, #tpu.memory_space<smem>>
    %54 = vector.extract_strided_slice %0 {offsets = [0, 1, 3, 0], sizes = [1, 4, 6, 128], strides = [1, 1, 1, 1]} : vector<1x6x10x128xf32> to vector<1x4x6x128xf32>
    %55 = vector.shape_cast %54 : vector<1x4x6x128xf32> to vector<4x6x128xf32>
    %56 = vector.broadcast %53 : f32 to vector<4x6x128xf32>
    %57 = arith.mulf %55, %56 : vector<4x6x128xf32>
    %58 = arith.addf %52, %57 : vector<4x6x128xf32>
    %c9 = arith.constant 9 : index
    %59 = memref.load %arg2[%c9] : memref<45xf32, #tpu.memory_space<smem>>
    %60 = vector.extract_strided_slice %0 {offsets = [0, 1, 4, 0], sizes = [1, 4, 6, 128], strides = [1, 1, 1, 1]} : vector<1x6x10x128xf32> to vector<1x4x6x128xf32>
    %61 = vector.shape_cast %60 : vector<1x4x6x128xf32> to vector<4x6x128xf32>
    %62 = vector.broadcast %59 : f32 to vector<4x6x128xf32>
    %63 = arith.mulf %61, %62 : vector<4x6x128xf32>
    %64 = arith.addf %58, %63 : vector<4x6x128xf32>
    %c10 = arith.constant 10 : index
    %65 = memref.load %arg2[%c10] : memref<45xf32, #tpu.memory_space<smem>>
    %66 = vector.extract_strided_slice %0 {offsets = [0, 2, 0, 0], sizes = [1, 4, 6, 128], strides = [1, 1, 1, 1]} : vector<1x6x10x128xf32> to vector<1x4x6x128xf32>
    %67 = vector.shape_cast %66 : vector<1x4x6x128xf32> to vector<4x6x128xf32>
    %68 = vector.broadcast %65 : f32 to vector<4x6x128xf32>
    %69 = arith.mulf %67, %68 : vector<4x6x128xf32>
    %70 = arith.addf %64, %69 : vector<4x6x128xf32>
    %c11 = arith.constant 11 : index
    %71 = memref.load %arg2[%c11] : memref<45xf32, #tpu.memory_space<smem>>
    %72 = vector.extract_strided_slice %0 {offsets = [0, 2, 1, 0], sizes = [1, 4, 6, 128], strides = [1, 1, 1, 1]} : vector<1x6x10x128xf32> to vector<1x4x6x128xf32>
    %73 = vector.shape_cast %72 : vector<1x4x6x128xf32> to vector<4x6x128xf32>
    %74 = vector.broadcast %71 : f32 to vector<4x6x128xf32>
    %75 = arith.mulf %73, %74 : vector<4x6x128xf32>
    %76 = arith.addf %70, %75 : vector<4x6x128xf32>
    %c12 = arith.constant 12 : index
    %77 = memref.load %arg2[%c12] : memref<45xf32, #tpu.memory_space<smem>>
    %78 = vector.extract_strided_slice %0 {offsets = [0, 2, 2, 0], sizes = [1, 4, 6, 128], strides = [1, 1, 1, 1]} : vector<1x6x10x128xf32> to vector<1x4x6x128xf32>
    %79 = vector.shape_cast %78 : vector<1x4x6x128xf32> to vector<4x6x128xf32>
    %80 = vector.broadcast %77 : f32 to vector<4x6x128xf32>
    %81 = arith.mulf %79, %80 : vector<4x6x128xf32>
    %82 = arith.addf %76, %81 : vector<4x6x128xf32>
    %c13 = arith.constant 13 : index
    %83 = memref.load %arg2[%c13] : memref<45xf32, #tpu.memory_space<smem>>
    %84 = vector.extract_strided_slice %0 {offsets = [0, 2, 3, 0], sizes = [1, 4, 6, 128], strides = [1, 1, 1, 1]} : vector<1x6x10x128xf32> to vector<1x4x6x128xf32>
    %85 = vector.shape_cast %84 : vector<1x4x6x128xf32> to vector<4x6x128xf32>
    %86 = vector.broadcast %83 : f32 to vector<4x6x128xf32>
    %87 = arith.mulf %85, %86 : vector<4x6x128xf32>
    %88 = arith.addf %82, %87 : vector<4x6x128xf32>
    %c14 = arith.constant 14 : index
    %89 = memref.load %arg2[%c14] : memref<45xf32, #tpu.memory_space<smem>>
    %90 = vector.extract_strided_slice %0 {offsets = [0, 2, 4, 0], sizes = [1, 4, 6, 128], strides = [1, 1, 1, 1]} : vector<1x6x10x128xf32> to vector<1x4x6x128xf32>
    %91 = vector.shape_cast %90 : vector<1x4x6x128xf32> to vector<4x6x128xf32>
    %92 = vector.broadcast %89 : f32 to vector<4x6x128xf32>
    %93 = arith.mulf %91, %92 : vector<4x6x128xf32>
    %94 = arith.addf %88, %93 : vector<4x6x128xf32>
    %95 = vector.extract_strided_slice %94 {offsets = [0, 0, 0], sizes = [1, 1, 128], strides = [1, 1, 1]} : vector<4x6x128xf32> to vector<1x1x128xf32>
    %96 = vector.shape_cast %95 : vector<1x1x128xf32> to vector<1x128xf32>
    %97 = vector.extract_strided_slice %94 {offsets = [0, 1, 0], sizes = [1, 1, 128], strides = [1, 1, 1]} : vector<4x6x128xf32> to vector<1x1x128xf32>
    %98 = vector.shape_cast %97 : vector<1x1x128xf32> to vector<1x128xf32>
    %99 = vector.extract_strided_slice %94 {offsets = [1, 0, 0], sizes = [1, 1, 128], strides = [1, 1, 1]} : vector<4x6x128xf32> to vector<1x1x128xf32>
    %100 = vector.shape_cast %99 : vector<1x1x128xf32> to vector<1x128xf32>
    %101 = vector.extract_strided_slice %94 {offsets = [1, 1, 0], sizes = [1, 1, 128], strides = [1, 1, 1]} : vector<4x6x128xf32> to vector<1x1x128xf32>
    %102 = vector.shape_cast %101 : vector<1x1x128xf32> to vector<1x128xf32>
    %c0_i32 = arith.constant 0 : i32
    %103 = vector.broadcast %c0_i32 : i32 to vector<1x128xi32>
    %104 = arith.cmpf ogt, %98, %96 : vector<1x128xf32>
    %c1_i32 = arith.constant 1 : i32
    %105 = vector.broadcast %c1_i32 : i32 to vector<1x128xi32>
    %106 = arith.select %104, %105, %103 : vector<1x128xi1>, vector<1x128xi32>
    %107 = arith.select %104, %98, %96 : vector<1x128xi1>, vector<1x128xf32>
    %108 = arith.cmpf ogt, %100, %107 : vector<1x128xf32>
    %c6_i32 = arith.constant 6 : i32
    %109 = vector.broadcast %c6_i32 : i32 to vector<1x128xi32>
    %110 = arith.select %108, %109, %106 : vector<1x128xi1>, vector<1x128xi32>
    %111 = arith.select %108, %100, %107 : vector<1x128xi1>, vector<1x128xf32>
    %112 = arith.cmpf ogt, %102, %111 : vector<1x128xf32>
    %c7_i32 = arith.constant 7 : i32
    %113 = vector.broadcast %c7_i32 : i32 to vector<1x128xi32>
    %114 = arith.select %112, %113, %110 : vector<1x128xi1>, vector<1x128xi32>
    %115 = arith.select %112, %102, %111 : vector<1x128xi1>, vector<1x128xf32>
    %116 = vector.extract_strided_slice %94 {offsets = [0, 2, 0], sizes = [1, 1, 128], strides = [1, 1, 1]} : vector<4x6x128xf32> to vector<1x1x128xf32>
    %117 = vector.shape_cast %116 : vector<1x1x128xf32> to vector<1x128xf32>
    %118 = vector.extract_strided_slice %94 {offsets = [0, 3, 0], sizes = [1, 1, 128], strides = [1, 1, 1]} : vector<4x6x128xf32> to vector<1x1x128xf32>
    %119 = vector.shape_cast %118 : vector<1x1x128xf32> to vector<1x128xf32>
    %120 = vector.extract_strided_slice %94 {offsets = [1, 2, 0], sizes = [1, 1, 128], strides = [1, 1, 1]} : vector<4x6x128xf32> to vector<1x1x128xf32>
    %121 = vector.shape_cast %120 : vector<1x1x128xf32> to vector<1x128xf32>
    %122 = vector.extract_strided_slice %94 {offsets = [1, 3, 0], sizes = [1, 1, 128], strides = [1, 1, 1]} : vector<4x6x128xf32> to vector<1x1x128xf32>
    %123 = vector.shape_cast %122 : vector<1x1x128xf32> to vector<1x128xf32>
    %c2_i32 = arith.constant 2 : i32
    %124 = vector.broadcast %c2_i32 : i32 to vector<1x128xi32>
    %125 = arith.cmpf ogt, %119, %117 : vector<1x128xf32>
    %c3_i32 = arith.constant 3 : i32
    %126 = vector.broadcast %c3_i32 : i32 to vector<1x128xi32>
    %127 = arith.select %125, %126, %124 : vector<1x128xi1>, vector<1x128xi32>
    %128 = arith.select %125, %119, %117 : vector<1x128xi1>, vector<1x128xf32>
    %129 = arith.cmpf ogt, %121, %128 : vector<1x128xf32>
    %c8_i32 = arith.constant 8 : i32
    %130 = vector.broadcast %c8_i32 : i32 to vector<1x128xi32>
    %131 = arith.select %129, %130, %127 : vector<1x128xi1>, vector<1x128xi32>
    %132 = arith.select %129, %121, %128 : vector<1x128xi1>, vector<1x128xf32>
    %133 = arith.cmpf ogt, %123, %132 : vector<1x128xf32>
    %c9_i32 = arith.constant 9 : i32
    %134 = vector.broadcast %c9_i32 : i32 to vector<1x128xi32>
    %135 = arith.select %133, %134, %131 : vector<1x128xi1>, vector<1x128xi32>
    %136 = arith.select %133, %123, %132 : vector<1x128xi1>, vector<1x128xf32>
    %137 = vector.extract_strided_slice %94 {offsets = [0, 4, 0], sizes = [1, 1, 128], strides = [1, 1, 1]} : vector<4x6x128xf32> to vector<1x1x128xf32>
    %138 = vector.shape_cast %137 : vector<1x1x128xf32> to vector<1x128xf32>
    %139 = vector.extract_strided_slice %94 {offsets = [0, 5, 0], sizes = [1, 1, 128], strides = [1, 1, 1]} : vector<4x6x128xf32> to vector<1x1x128xf32>
    %140 = vector.shape_cast %139 : vector<1x1x128xf32> to vector<1x128xf32>
    %141 = vector.extract_strided_slice %94 {offsets = [1, 4, 0], sizes = [1, 1, 128], strides = [1, 1, 1]} : vector<4x6x128xf32> to vector<1x1x128xf32>
    %142 = vector.shape_cast %141 : vector<1x1x128xf32> to vector<1x128xf32>
    %143 = vector.extract_strided_slice %94 {offsets = [1, 5, 0], sizes = [1, 1, 128], strides = [1, 1, 1]} : vector<4x6x128xf32> to vector<1x1x128xf32>
    %144 = vector.shape_cast %143 : vector<1x1x128xf32> to vector<1x128xf32>
    %c4_i32 = arith.constant 4 : i32
    %145 = vector.broadcast %c4_i32 : i32 to vector<1x128xi32>
    %146 = arith.cmpf ogt, %140, %138 : vector<1x128xf32>
    %c5_i32 = arith.constant 5 : i32
    %147 = vector.broadcast %c5_i32 : i32 to vector<1x128xi32>
    %148 = arith.select %146, %147, %145 : vector<1x128xi1>, vector<1x128xi32>
    %149 = arith.select %146, %140, %138 : vector<1x128xi1>, vector<1x128xf32>
    %150 = arith.cmpf ogt, %142, %149 : vector<1x128xf32>
    %c10_i32 = arith.constant 10 : i32
    %151 = vector.broadcast %c10_i32 : i32 to vector<1x128xi32>
    %152 = arith.select %150, %151, %148 : vector<1x128xi1>, vector<1x128xi32>
    %153 = arith.select %150, %142, %149 : vector<1x128xi1>, vector<1x128xf32>
    %154 = arith.cmpf ogt, %144, %153 : vector<1x128xf32>
    %c11_i32 = arith.constant 11 : i32
    %155 = vector.broadcast %c11_i32 : i32 to vector<1x128xi32>
    %156 = arith.select %154, %155, %152 : vector<1x128xi1>, vector<1x128xi32>
    %157 = arith.select %154, %144, %153 : vector<1x128xi1>, vector<1x128xf32>
    %158 = vector.extract_strided_slice %94 {offsets = [2, 0, 0], sizes = [1, 1, 128], strides = [1, 1, 1]} : vector<4x6x128xf32> to vector<1x1x128xf32>
    %159 = vector.shape_cast %158 : vector<1x1x128xf32> to vector<1x128xf32>
    %160 = vector.extract_strided_slice %94 {offsets = [2, 1, 0], sizes = [1, 1, 128], strides = [1, 1, 1]} : vector<4x6x128xf32> to vector<1x1x128xf32>
    %161 = vector.shape_cast %160 : vector<1x1x128xf32> to vector<1x128xf32>
    %162 = vector.extract_strided_slice %94 {offsets = [3, 0, 0], sizes = [1, 1, 128], strides = [1, 1, 1]} : vector<4x6x128xf32> to vector<1x1x128xf32>
    %163 = vector.shape_cast %162 : vector<1x1x128xf32> to vector<1x128xf32>
    %164 = vector.extract_strided_slice %94 {offsets = [3, 1, 0], sizes = [1, 1, 128], strides = [1, 1, 1]} : vector<4x6x128xf32> to vector<1x1x128xf32>
    %165 = vector.shape_cast %164 : vector<1x1x128xf32> to vector<1x128xf32>
    %c12_i32 = arith.constant 12 : i32
    %166 = vector.broadcast %c12_i32 : i32 to vector<1x128xi32>
    %167 = arith.cmpf ogt, %161, %159 : vector<1x128xf32>
    %c13_i32 = arith.constant 13 : i32
    %168 = vector.broadcast %c13_i32 : i32 to vector<1x128xi32>
    %169 = arith.select %167, %168, %166 : vector<1x128xi1>, vector<1x128xi32>
    %170 = arith.select %167, %161, %159 : vector<1x128xi1>, vector<1x128xf32>
    %171 = arith.cmpf ogt, %163, %170 : vector<1x128xf32>
    %c18_i32 = arith.constant 18 : i32
    %172 = vector.broadcast %c18_i32 : i32 to vector<1x128xi32>
    %173 = arith.select %171, %172, %169 : vector<1x128xi1>, vector<1x128xi32>
    %174 = arith.select %171, %163, %170 : vector<1x128xi1>, vector<1x128xf32>
    %175 = arith.cmpf ogt, %165, %174 : vector<1x128xf32>
    %c19_i32 = arith.constant 19 : i32
    %176 = vector.broadcast %c19_i32 : i32 to vector<1x128xi32>
    %177 = arith.select %175, %176, %173 : vector<1x128xi1>, vector<1x128xi32>
    %178 = arith.select %175, %165, %174 : vector<1x128xi1>, vector<1x128xf32>
    %179 = vector.extract_strided_slice %94 {offsets = [2, 2, 0], sizes = [1, 1, 128], strides = [1, 1, 1]} : vector<4x6x128xf32> to vector<1x1x128xf32>
    %180 = vector.shape_cast %179 : vector<1x1x128xf32> to vector<1x128xf32>
    %181 = vector.extract_strided_slice %94 {offsets = [2, 3, 0], sizes = [1, 1, 128], strides = [1, 1, 1]} : vector<4x6x128xf32> to vector<1x1x128xf32>
    %182 = vector.shape_cast %181 : vector<1x1x128xf32> to vector<1x128xf32>
    %183 = vector.extract_strided_slice %94 {offsets = [3, 2, 0], sizes = [1, 1, 128], strides = [1, 1, 1]} : vector<4x6x128xf32> to vector<1x1x128xf32>
    %184 = vector.shape_cast %183 : vector<1x1x128xf32> to vector<1x128xf32>
    %185 = vector.extract_strided_slice %94 {offsets = [3, 3, 0], sizes = [1, 1, 128], strides = [1, 1, 1]} : vector<4x6x128xf32> to vector<1x1x128xf32>
    %186 = vector.shape_cast %185 : vector<1x1x128xf32> to vector<1x128xf32>
    %c14_i32 = arith.constant 14 : i32
    %187 = vector.broadcast %c14_i32 : i32 to vector<1x128xi32>
    %188 = arith.cmpf ogt, %182, %180 : vector<1x128xf32>
    %c15_i32 = arith.constant 15 : i32
    %189 = vector.broadcast %c15_i32 : i32 to vector<1x128xi32>
    %190 = arith.select %188, %189, %187 : vector<1x128xi1>, vector<1x128xi32>
    %191 = arith.select %188, %182, %180 : vector<1x128xi1>, vector<1x128xf32>
    %192 = arith.cmpf ogt, %184, %191 : vector<1x128xf32>
    %c20_i32 = arith.constant 20 : i32
    %193 = vector.broadcast %c20_i32 : i32 to vector<1x128xi32>
    %194 = arith.select %192, %193, %190 : vector<1x128xi1>, vector<1x128xi32>
    %195 = arith.select %192, %184, %191 : vector<1x128xi1>, vector<1x128xf32>
    %196 = arith.cmpf ogt, %186, %195 : vector<1x128xf32>
    %c21_i32 = arith.constant 21 : i32
    %197 = vector.broadcast %c21_i32 : i32 to vector<1x128xi32>
    %198 = arith.select %196, %197, %194 : vector<1x128xi1>, vector<1x128xi32>
    %199 = arith.select %196, %186, %195 : vector<1x128xi1>, vector<1x128xf32>
    %200 = vector.extract_strided_slice %94 {offsets = [2, 4, 0], sizes = [1, 1, 128], strides = [1, 1, 1]} : vector<4x6x128xf32> to vector<1x1x128xf32>
    %201 = vector.shape_cast %200 : vector<1x1x128xf32> to vector<1x128xf32>
    %202 = vector.extract_strided_slice %94 {offsets = [2, 5, 0], sizes = [1, 1, 128], strides = [1, 1, 1]} : vector<4x6x128xf32> to vector<1x1x128xf32>
    %203 = vector.shape_cast %202 : vector<1x1x128xf32> to vector<1x128xf32>
    %204 = vector.extract_strided_slice %94 {offsets = [3, 4, 0], sizes = [1, 1, 128], strides = [1, 1, 1]} : vector<4x6x128xf32> to vector<1x1x128xf32>
    %205 = vector.shape_cast %204 : vector<1x1x128xf32> to vector<1x128xf32>
    %206 = vector.extract_strided_slice %94 {offsets = [3, 5, 0], sizes = [1, 1, 128], strides = [1, 1, 1]} : vector<4x6x128xf32> to vector<1x1x128xf32>
    %207 = vector.shape_cast %206 : vector<1x1x128xf32> to vector<1x128xf32>
    %c16_i32 = arith.constant 16 : i32
    %208 = vector.broadcast %c16_i32 : i32 to vector<1x128xi32>
    %209 = arith.cmpf ogt, %203, %201 : vector<1x128xf32>
    %c17_i32 = arith.constant 17 : i32
    %210 = vector.broadcast %c17_i32 : i32 to vector<1x128xi32>
    %211 = arith.select %209, %210, %208 : vector<1x128xi1>, vector<1x128xi32>
    %212 = arith.select %209, %203, %201 : vector<1x128xi1>, vector<1x128xf32>
    %213 = arith.cmpf ogt, %205, %212 : vector<1x128xf32>
    %c22_i32 = arith.constant 22 : i32
    %214 = vector.broadcast %c22_i32 : i32 to vector<1x128xi32>
    %215 = arith.select %213, %214, %211 : vector<1x128xi1>, vector<1x128xi32>
    %216 = arith.select %213, %205, %212 : vector<1x128xi1>, vector<1x128xf32>
    %217 = arith.cmpf ogt, %207, %216 : vector<1x128xf32>
    %c23_i32 = arith.constant 23 : i32
    %218 = vector.broadcast %c23_i32 : i32 to vector<1x128xi32>
    %219 = arith.select %217, %218, %215 : vector<1x128xi1>, vector<1x128xi32>
    %220 = arith.select %217, %207, %216 : vector<1x128xi1>, vector<1x128xf32>
    %cst_5 = arith.constant 0.000000e+00 : f32
    %221 = vector.broadcast %cst_5 : f32 to vector<4x6x128xf32>
    %c1_6 = arith.constant 1 : index
    %222 = memref.load %arg3[%c1_6] : memref<3xf32, #tpu.memory_space<smem>>
    %223 = vector.broadcast %222 : f32 to vector<4x6x128xf32>
    %224 = arith.addf %221, %223 : vector<4x6x128xf32>
    %c15 = arith.constant 15 : index
    %225 = memref.load %arg2[%c15] : memref<45xf32, #tpu.memory_space<smem>>
    %226 = vector.extract_strided_slice %0 {offsets = [0, 0, 0, 0], sizes = [1, 4, 6, 128], strides = [1, 1, 1, 1]} : vector<1x6x10x128xf32> to vector<1x4x6x128xf32>
    %227 = vector.shape_cast %226 : vector<1x4x6x128xf32> to vector<4x6x128xf32>
    %228 = vector.broadcast %225 : f32 to vector<4x6x128xf32>
    %229 = arith.mulf %227, %228 : vector<4x6x128xf32>
    %230 = arith.addf %224, %229 : vector<4x6x128xf32>
    %c16 = arith.constant 16 : index
    %231 = memref.load %arg2[%c16] : memref<45xf32, #tpu.memory_space<smem>>
    %232 = vector.extract_strided_slice %0 {offsets = [0, 0, 1, 0], sizes = [1, 4, 6, 128], strides = [1, 1, 1, 1]} : vector<1x6x10x128xf32> to vector<1x4x6x128xf32>
    %233 = vector.shape_cast %232 : vector<1x4x6x128xf32> to vector<4x6x128xf32>
    %234 = vector.broadcast %231 : f32 to vector<4x6x128xf32>
    %235 = arith.mulf %233, %234 : vector<4x6x128xf32>
    %236 = arith.addf %230, %235 : vector<4x6x128xf32>
    %c17 = arith.constant 17 : index
    %237 = memref.load %arg2[%c17] : memref<45xf32, #tpu.memory_space<smem>>
    %238 = vector.extract_strided_slice %0 {offsets = [0, 0, 2, 0], sizes = [1, 4, 6, 128], strides = [1, 1, 1, 1]} : vector<1x6x10x128xf32> to vector<1x4x6x128xf32>
    %239 = vector.shape_cast %238 : vector<1x4x6x128xf32> to vector<4x6x128xf32>
    %240 = vector.broadcast %237 : f32 to vector<4x6x128xf32>
    %241 = arith.mulf %239, %240 : vector<4x6x128xf32>
    %242 = arith.addf %236, %241 : vector<4x6x128xf32>
    %c18 = arith.constant 18 : index
    %243 = memref.load %arg2[%c18] : memref<45xf32, #tpu.memory_space<smem>>
    %244 = vector.extract_strided_slice %0 {offsets = [0, 0, 3, 0], sizes = [1, 4, 6, 128], strides = [1, 1, 1, 1]} : vector<1x6x10x128xf32> to vector<1x4x6x128xf32>
    %245 = vector.shape_cast %244 : vector<1x4x6x128xf32> to vector<4x6x128xf32>
    %246 = vector.broadcast %243 : f32 to vector<4x6x128xf32>
    %247 = arith.mulf %245, %246 : vector<4x6x128xf32>
    %248 = arith.addf %242, %247 : vector<4x6x128xf32>
    %c19 = arith.constant 19 : index
    %249 = memref.load %arg2[%c19] : memref<45xf32, #tpu.memory_space<smem>>
    %250 = vector.extract_strided_slice %0 {offsets = [0, 0, 4, 0], sizes = [1, 4, 6, 128], strides = [1, 1, 1, 1]} : vector<1x6x10x128xf32> to vector<1x4x6x128xf32>
    %251 = vector.shape_cast %250 : vector<1x4x6x128xf32> to vector<4x6x128xf32>
    %252 = vector.broadcast %249 : f32 to vector<4x6x128xf32>
    %253 = arith.mulf %251, %252 : vector<4x6x128xf32>
    %254 = arith.addf %248, %253 : vector<4x6x128xf32>
    %c20 = arith.constant 20 : index
    %255 = memref.load %arg2[%c20] : memref<45xf32, #tpu.memory_space<smem>>
    %256 = vector.extract_strided_slice %0 {offsets = [0, 1, 0, 0], sizes = [1, 4, 6, 128], strides = [1, 1, 1, 1]} : vector<1x6x10x128xf32> to vector<1x4x6x128xf32>
    %257 = vector.shape_cast %256 : vector<1x4x6x128xf32> to vector<4x6x128xf32>
    %258 = vector.broadcast %255 : f32 to vector<4x6x128xf32>
    %259 = arith.mulf %257, %258 : vector<4x6x128xf32>
    %260 = arith.addf %254, %259 : vector<4x6x128xf32>
    %c21 = arith.constant 21 : index
    %261 = memref.load %arg2[%c21] : memref<45xf32, #tpu.memory_space<smem>>
    %262 = vector.extract_strided_slice %0 {offsets = [0, 1, 1, 0], sizes = [1, 4, 6, 128], strides = [1, 1, 1, 1]} : vector<1x6x10x128xf32> to vector<1x4x6x128xf32>
    %263 = vector.shape_cast %262 : vector<1x4x6x128xf32> to vector<4x6x128xf32>
    %264 = vector.broadcast %261 : f32 to vector<4x6x128xf32>
    %265 = arith.mulf %263, %264 : vector<4x6x128xf32>
    %266 = arith.addf %260, %265 : vector<4x6x128xf32>
    %c22 = arith.constant 22 : index
    %267 = memref.load %arg2[%c22] : memref<45xf32, #tpu.memory_space<smem>>
    %268 = vector.extract_strided_slice %0 {offsets = [0, 1, 2, 0], sizes = [1, 4, 6, 128], strides = [1, 1, 1, 1]} : vector<1x6x10x128xf32> to vector<1x4x6x128xf32>
    %269 = vector.shape_cast %268 : vector<1x4x6x128xf32> to vector<4x6x128xf32>
    %270 = vector.broadcast %267 : f32 to vector<4x6x128xf32>
    %271 = arith.mulf %269, %270 : vector<4x6x128xf32>
    %272 = arith.addf %266, %271 : vector<4x6x128xf32>
    %c23 = arith.constant 23 : index
    %273 = memref.load %arg2[%c23] : memref<45xf32, #tpu.memory_space<smem>>
    %274 = vector.extract_strided_slice %0 {offsets = [0, 1, 3, 0], sizes = [1, 4, 6, 128], strides = [1, 1, 1, 1]} : vector<1x6x10x128xf32> to vector<1x4x6x128xf32>
    %275 = vector.shape_cast %274 : vector<1x4x6x128xf32> to vector<4x6x128xf32>
    %276 = vector.broadcast %273 : f32 to vector<4x6x128xf32>
    %277 = arith.mulf %275, %276 : vector<4x6x128xf32>
    %278 = arith.addf %272, %277 : vector<4x6x128xf32>
    %c24 = arith.constant 24 : index
    %279 = memref.load %arg2[%c24] : memref<45xf32, #tpu.memory_space<smem>>
    %280 = vector.extract_strided_slice %0 {offsets = [0, 1, 4, 0], sizes = [1, 4, 6, 128], strides = [1, 1, 1, 1]} : vector<1x6x10x128xf32> to vector<1x4x6x128xf32>
    %281 = vector.shape_cast %280 : vector<1x4x6x128xf32> to vector<4x6x128xf32>
    %282 = vector.broadcast %279 : f32 to vector<4x6x128xf32>
    %283 = arith.mulf %281, %282 : vector<4x6x128xf32>
    %284 = arith.addf %278, %283 : vector<4x6x128xf32>
    %c25 = arith.constant 25 : index
    %285 = memref.load %arg2[%c25] : memref<45xf32, #tpu.memory_space<smem>>
    %286 = vector.extract_strided_slice %0 {offsets = [0, 2, 0, 0], sizes = [1, 4, 6, 128], strides = [1, 1, 1, 1]} : vector<1x6x10x128xf32> to vector<1x4x6x128xf32>
    %287 = vector.shape_cast %286 : vector<1x4x6x128xf32> to vector<4x6x128xf32>
    %288 = vector.broadcast %285 : f32 to vector<4x6x128xf32>
    %289 = arith.mulf %287, %288 : vector<4x6x128xf32>
    %290 = arith.addf %284, %289 : vector<4x6x128xf32>
    %c26 = arith.constant 26 : index
    %291 = memref.load %arg2[%c26] : memref<45xf32, #tpu.memory_space<smem>>
    %292 = vector.extract_strided_slice %0 {offsets = [0, 2, 1, 0], sizes = [1, 4, 6, 128], strides = [1, 1, 1, 1]} : vector<1x6x10x128xf32> to vector<1x4x6x128xf32>
    %293 = vector.shape_cast %292 : vector<1x4x6x128xf32> to vector<4x6x128xf32>
    %294 = vector.broadcast %291 : f32 to vector<4x6x128xf32>
    %295 = arith.mulf %293, %294 : vector<4x6x128xf32>
    %296 = arith.addf %290, %295 : vector<4x6x128xf32>
    %c27 = arith.constant 27 : index
    %297 = memref.load %arg2[%c27] : memref<45xf32, #tpu.memory_space<smem>>
    %298 = vector.extract_strided_slice %0 {offsets = [0, 2, 2, 0], sizes = [1, 4, 6, 128], strides = [1, 1, 1, 1]} : vector<1x6x10x128xf32> to vector<1x4x6x128xf32>
    %299 = vector.shape_cast %298 : vector<1x4x6x128xf32> to vector<4x6x128xf32>
    %300 = vector.broadcast %297 : f32 to vector<4x6x128xf32>
    %301 = arith.mulf %299, %300 : vector<4x6x128xf32>
    %302 = arith.addf %296, %301 : vector<4x6x128xf32>
    %c28 = arith.constant 28 : index
    %303 = memref.load %arg2[%c28] : memref<45xf32, #tpu.memory_space<smem>>
    %304 = vector.extract_strided_slice %0 {offsets = [0, 2, 3, 0], sizes = [1, 4, 6, 128], strides = [1, 1, 1, 1]} : vector<1x6x10x128xf32> to vector<1x4x6x128xf32>
    %305 = vector.shape_cast %304 : vector<1x4x6x128xf32> to vector<4x6x128xf32>
    %306 = vector.broadcast %303 : f32 to vector<4x6x128xf32>
    %307 = arith.mulf %305, %306 : vector<4x6x128xf32>
    %308 = arith.addf %302, %307 : vector<4x6x128xf32>
    %c29 = arith.constant 29 : index
    %309 = memref.load %arg2[%c29] : memref<45xf32, #tpu.memory_space<smem>>
    %310 = vector.extract_strided_slice %0 {offsets = [0, 2, 4, 0], sizes = [1, 4, 6, 128], strides = [1, 1, 1, 1]} : vector<1x6x10x128xf32> to vector<1x4x6x128xf32>
    %311 = vector.shape_cast %310 : vector<1x4x6x128xf32> to vector<4x6x128xf32>
    %312 = vector.broadcast %309 : f32 to vector<4x6x128xf32>
    %313 = arith.mulf %311, %312 : vector<4x6x128xf32>
    %314 = arith.addf %308, %313 : vector<4x6x128xf32>
    %315 = vector.extract_strided_slice %314 {offsets = [0, 0, 0], sizes = [1, 1, 128], strides = [1, 1, 1]} : vector<4x6x128xf32> to vector<1x1x128xf32>
    %316 = vector.shape_cast %315 : vector<1x1x128xf32> to vector<1x128xf32>
    %317 = vector.extract_strided_slice %314 {offsets = [0, 1, 0], sizes = [1, 1, 128], strides = [1, 1, 1]} : vector<4x6x128xf32> to vector<1x1x128xf32>
    %318 = vector.shape_cast %317 : vector<1x1x128xf32> to vector<1x128xf32>
    %319 = vector.extract_strided_slice %314 {offsets = [1, 0, 0], sizes = [1, 1, 128], strides = [1, 1, 1]} : vector<4x6x128xf32> to vector<1x1x128xf32>
    %320 = vector.shape_cast %319 : vector<1x1x128xf32> to vector<1x128xf32>
    %321 = vector.extract_strided_slice %314 {offsets = [1, 1, 0], sizes = [1, 1, 128], strides = [1, 1, 1]} : vector<4x6x128xf32> to vector<1x1x128xf32>
    %322 = vector.shape_cast %321 : vector<1x1x128xf32> to vector<1x128xf32>
    %c0_i32_7 = arith.constant 0 : i32
    %323 = vector.broadcast %c0_i32_7 : i32 to vector<1x128xi32>
    %324 = arith.cmpf ogt, %318, %316 : vector<1x128xf32>
    %c1_i32_8 = arith.constant 1 : i32
    %325 = vector.broadcast %c1_i32_8 : i32 to vector<1x128xi32>
    %326 = arith.select %324, %325, %323 : vector<1x128xi1>, vector<1x128xi32>
    %327 = arith.select %324, %318, %316 : vector<1x128xi1>, vector<1x128xf32>
    %328 = arith.cmpf ogt, %320, %327 : vector<1x128xf32>
    %c6_i32_9 = arith.constant 6 : i32
    %329 = vector.broadcast %c6_i32_9 : i32 to vector<1x128xi32>
    %330 = arith.select %328, %329, %326 : vector<1x128xi1>, vector<1x128xi32>
    %331 = arith.select %328, %320, %327 : vector<1x128xi1>, vector<1x128xf32>
    %332 = arith.cmpf ogt, %322, %331 : vector<1x128xf32>
    %c7_i32_10 = arith.constant 7 : i32
    %333 = vector.broadcast %c7_i32_10 : i32 to vector<1x128xi32>
    %334 = arith.select %332, %333, %330 : vector<1x128xi1>, vector<1x128xi32>
    %335 = arith.select %332, %322, %331 : vector<1x128xi1>, vector<1x128xf32>
    %336 = vector.extract_strided_slice %314 {offsets = [0, 2, 0], sizes = [1, 1, 128], strides = [1, 1, 1]} : vector<4x6x128xf32> to vector<1x1x128xf32>
    %337 = vector.shape_cast %336 : vector<1x1x128xf32> to vector<1x128xf32>
    %338 = vector.extract_strided_slice %314 {offsets = [0, 3, 0], sizes = [1, 1, 128], strides = [1, 1, 1]} : vector<4x6x128xf32> to vector<1x1x128xf32>
    %339 = vector.shape_cast %338 : vector<1x1x128xf32> to vector<1x128xf32>
    %340 = vector.extract_strided_slice %314 {offsets = [1, 2, 0], sizes = [1, 1, 128], strides = [1, 1, 1]} : vector<4x6x128xf32> to vector<1x1x128xf32>
    %341 = vector.shape_cast %340 : vector<1x1x128xf32> to vector<1x128xf32>
    %342 = vector.extract_strided_slice %314 {offsets = [1, 3, 0], sizes = [1, 1, 128], strides = [1, 1, 1]} : vector<4x6x128xf32> to vector<1x1x128xf32>
    %343 = vector.shape_cast %342 : vector<1x1x128xf32> to vector<1x128xf32>
    %c2_i32_11 = arith.constant 2 : i32
    %344 = vector.broadcast %c2_i32_11 : i32 to vector<1x128xi32>
    %345 = arith.cmpf ogt, %339, %337 : vector<1x128xf32>
    %c3_i32_12 = arith.constant 3 : i32
    %346 = vector.broadcast %c3_i32_12 : i32 to vector<1x128xi32>
    %347 = arith.select %345, %346, %344 : vector<1x128xi1>, vector<1x128xi32>
    %348 = arith.select %345, %339, %337 : vector<1x128xi1>, vector<1x128xf32>
    %349 = arith.cmpf ogt, %341, %348 : vector<1x128xf32>
    %c8_i32_13 = arith.constant 8 : i32
    %350 = vector.broadcast %c8_i32_13 : i32 to vector<1x128xi32>
    %351 = arith.select %349, %350, %347 : vector<1x128xi1>, vector<1x128xi32>
    %352 = arith.select %349, %341, %348 : vector<1x128xi1>, vector<1x128xf32>
    %353 = arith.cmpf ogt, %343, %352 : vector<1x128xf32>
    %c9_i32_14 = arith.constant 9 : i32
    %354 = vector.broadcast %c9_i32_14 : i32 to vector<1x128xi32>
    %355 = arith.select %353, %354, %351 : vector<1x128xi1>, vector<1x128xi32>
    %356 = arith.select %353, %343, %352 : vector<1x128xi1>, vector<1x128xf32>
    %357 = vector.extract_strided_slice %314 {offsets = [0, 4, 0], sizes = [1, 1, 128], strides = [1, 1, 1]} : vector<4x6x128xf32> to vector<1x1x128xf32>
    %358 = vector.shape_cast %357 : vector<1x1x128xf32> to vector<1x128xf32>
    %359 = vector.extract_strided_slice %314 {offsets = [0, 5, 0], sizes = [1, 1, 128], strides = [1, 1, 1]} : vector<4x6x128xf32> to vector<1x1x128xf32>
    %360 = vector.shape_cast %359 : vector<1x1x128xf32> to vector<1x128xf32>
    %361 = vector.extract_strided_slice %314 {offsets = [1, 4, 0], sizes = [1, 1, 128], strides = [1, 1, 1]} : vector<4x6x128xf32> to vector<1x1x128xf32>
    %362 = vector.shape_cast %361 : vector<1x1x128xf32> to vector<1x128xf32>
    %363 = vector.extract_strided_slice %314 {offsets = [1, 5, 0], sizes = [1, 1, 128], strides = [1, 1, 1]} : vector<4x6x128xf32> to vector<1x1x128xf32>
    %364 = vector.shape_cast %363 : vector<1x1x128xf32> to vector<1x128xf32>
    %c4_i32_15 = arith.constant 4 : i32
    %365 = vector.broadcast %c4_i32_15 : i32 to vector<1x128xi32>
    %366 = arith.cmpf ogt, %360, %358 : vector<1x128xf32>
    %c5_i32_16 = arith.constant 5 : i32
    %367 = vector.broadcast %c5_i32_16 : i32 to vector<1x128xi32>
    %368 = arith.select %366, %367, %365 : vector<1x128xi1>, vector<1x128xi32>
    %369 = arith.select %366, %360, %358 : vector<1x128xi1>, vector<1x128xf32>
    %370 = arith.cmpf ogt, %362, %369 : vector<1x128xf32>
    %c10_i32_17 = arith.constant 10 : i32
    %371 = vector.broadcast %c10_i32_17 : i32 to vector<1x128xi32>
    %372 = arith.select %370, %371, %368 : vector<1x128xi1>, vector<1x128xi32>
    %373 = arith.select %370, %362, %369 : vector<1x128xi1>, vector<1x128xf32>
    %374 = arith.cmpf ogt, %364, %373 : vector<1x128xf32>
    %c11_i32_18 = arith.constant 11 : i32
    %375 = vector.broadcast %c11_i32_18 : i32 to vector<1x128xi32>
    %376 = arith.select %374, %375, %372 : vector<1x128xi1>, vector<1x128xi32>
    %377 = arith.select %374, %364, %373 : vector<1x128xi1>, vector<1x128xf32>
    %378 = vector.extract_strided_slice %314 {offsets = [2, 0, 0], sizes = [1, 1, 128], strides = [1, 1, 1]} : vector<4x6x128xf32> to vector<1x1x128xf32>
    %379 = vector.shape_cast %378 : vector<1x1x128xf32> to vector<1x128xf32>
    %380 = vector.extract_strided_slice %314 {offsets = [2, 1, 0], sizes = [1, 1, 128], strides = [1, 1, 1]} : vector<4x6x128xf32> to vector<1x1x128xf32>
    %381 = vector.shape_cast %380 : vector<1x1x128xf32> to vector<1x128xf32>
    %382 = vector.extract_strided_slice %314 {offsets = [3, 0, 0], sizes = [1, 1, 128], strides = [1, 1, 1]} : vector<4x6x128xf32> to vector<1x1x128xf32>
    %383 = vector.shape_cast %382 : vector<1x1x128xf32> to vector<1x128xf32>
    %384 = vector.extract_strided_slice %314 {offsets = [3, 1, 0], sizes = [1, 1, 128], strides = [1, 1, 1]} : vector<4x6x128xf32> to vector<1x1x128xf32>
    %385 = vector.shape_cast %384 : vector<1x1x128xf32> to vector<1x128xf32>
    %c12_i32_19 = arith.constant 12 : i32
    %386 = vector.broadcast %c12_i32_19 : i32 to vector<1x128xi32>
    %387 = arith.cmpf ogt, %381, %379 : vector<1x128xf32>
    %c13_i32_20 = arith.constant 13 : i32
    %388 = vector.broadcast %c13_i32_20 : i32 to vector<1x128xi32>
    %389 = arith.select %387, %388, %386 : vector<1x128xi1>, vector<1x128xi32>
    %390 = arith.select %387, %381, %379 : vector<1x128xi1>, vector<1x128xf32>
    %391 = arith.cmpf ogt, %383, %390 : vector<1x128xf32>
    %c18_i32_21 = arith.constant 18 : i32
    %392 = vector.broadcast %c18_i32_21 : i32 to vector<1x128xi32>
    %393 = arith.select %391, %392, %389 : vector<1x128xi1>, vector<1x128xi32>
    %394 = arith.select %391, %383, %390 : vector<1x128xi1>, vector<1x128xf32>
    %395 = arith.cmpf ogt, %385, %394 : vector<1x128xf32>
    %c19_i32_22 = arith.constant 19 : i32
    %396 = vector.broadcast %c19_i32_22 : i32 to vector<1x128xi32>
    %397 = arith.select %395, %396, %393 : vector<1x128xi1>, vector<1x128xi32>
    %398 = arith.select %395, %385, %394 : vector<1x128xi1>, vector<1x128xf32>
    %399 = vector.extract_strided_slice %314 {offsets = [2, 2, 0], sizes = [1, 1, 128], strides = [1, 1, 1]} : vector<4x6x128xf32> to vector<1x1x128xf32>
    %400 = vector.shape_cast %399 : vector<1x1x128xf32> to vector<1x128xf32>
    %401 = vector.extract_strided_slice %314 {offsets = [2, 3, 0], sizes = [1, 1, 128], strides = [1, 1, 1]} : vector<4x6x128xf32> to vector<1x1x128xf32>
    %402 = vector.shape_cast %401 : vector<1x1x128xf32> to vector<1x128xf32>
    %403 = vector.extract_strided_slice %314 {offsets = [3, 2, 0], sizes = [1, 1, 128], strides = [1, 1, 1]} : vector<4x6x128xf32> to vector<1x1x128xf32>
    %404 = vector.shape_cast %403 : vector<1x1x128xf32> to vector<1x128xf32>
    %405 = vector.extract_strided_slice %314 {offsets = [3, 3, 0], sizes = [1, 1, 128], strides = [1, 1, 1]} : vector<4x6x128xf32> to vector<1x1x128xf32>
    %406 = vector.shape_cast %405 : vector<1x1x128xf32> to vector<1x128xf32>
    %c14_i32_23 = arith.constant 14 : i32
    %407 = vector.broadcast %c14_i32_23 : i32 to vector<1x128xi32>
    %408 = arith.cmpf ogt, %402, %400 : vector<1x128xf32>
    %c15_i32_24 = arith.constant 15 : i32
    %409 = vector.broadcast %c15_i32_24 : i32 to vector<1x128xi32>
    %410 = arith.select %408, %409, %407 : vector<1x128xi1>, vector<1x128xi32>
    %411 = arith.select %408, %402, %400 : vector<1x128xi1>, vector<1x128xf32>
    %412 = arith.cmpf ogt, %404, %411 : vector<1x128xf32>
    %c20_i32_25 = arith.constant 20 : i32
    %413 = vector.broadcast %c20_i32_25 : i32 to vector<1x128xi32>
    %414 = arith.select %412, %413, %410 : vector<1x128xi1>, vector<1x128xi32>
    %415 = arith.select %412, %404, %411 : vector<1x128xi1>, vector<1x128xf32>
    %416 = arith.cmpf ogt, %406, %415 : vector<1x128xf32>
    %c21_i32_26 = arith.constant 21 : i32
    %417 = vector.broadcast %c21_i32_26 : i32 to vector<1x128xi32>
    %418 = arith.select %416, %417, %414 : vector<1x128xi1>, vector<1x128xi32>
    %419 = arith.select %416, %406, %415 : vector<1x128xi1>, vector<1x128xf32>
    %420 = vector.extract_strided_slice %314 {offsets = [2, 4, 0], sizes = [1, 1, 128], strides = [1, 1, 1]} : vector<4x6x128xf32> to vector<1x1x128xf32>
    %421 = vector.shape_cast %420 : vector<1x1x128xf32> to vector<1x128xf32>
    %422 = vector.extract_strided_slice %314 {offsets = [2, 5, 0], sizes = [1, 1, 128], strides = [1, 1, 1]} : vector<4x6x128xf32> to vector<1x1x128xf32>
    %423 = vector.shape_cast %422 : vector<1x1x128xf32> to vector<1x128xf32>
    %424 = vector.extract_strided_slice %314 {offsets = [3, 4, 0], sizes = [1, 1, 128], strides = [1, 1, 1]} : vector<4x6x128xf32> to vector<1x1x128xf32>
    %425 = vector.shape_cast %424 : vector<1x1x128xf32> to vector<1x128xf32>
    %426 = vector.extract_strided_slice %314 {offsets = [3, 5, 0], sizes = [1, 1, 128], strides = [1, 1, 1]} : vector<4x6x128xf32> to vector<1x1x128xf32>
    %427 = vector.shape_cast %426 : vector<1x1x128xf32> to vector<1x128xf32>
    %c16_i32_27 = arith.constant 16 : i32
    %428 = vector.broadcast %c16_i32_27 : i32 to vector<1x128xi32>
    %429 = arith.cmpf ogt, %423, %421 : vector<1x128xf32>
    %c17_i32_28 = arith.constant 17 : i32
    %430 = vector.broadcast %c17_i32_28 : i32 to vector<1x128xi32>
    %431 = arith.select %429, %430, %428 : vector<1x128xi1>, vector<1x128xi32>
    %432 = arith.select %429, %423, %421 : vector<1x128xi1>, vector<1x128xf32>
    %433 = arith.cmpf ogt, %425, %432 : vector<1x128xf32>
    %c22_i32_29 = arith.constant 22 : i32
    %434 = vector.broadcast %c22_i32_29 : i32 to vector<1x128xi32>
    %435 = arith.select %433, %434, %431 : vector<1x128xi1>, vector<1x128xi32>
    %436 = arith.select %433, %425, %432 : vector<1x128xi1>, vector<1x128xf32>
    %437 = arith.cmpf ogt, %427, %436 : vector<1x128xf32>
    %c23_i32_30 = arith.constant 23 : i32
    %438 = vector.broadcast %c23_i32_30 : i32 to vector<1x128xi32>
    %439 = arith.select %437, %438, %435 : vector<1x128xi1>, vector<1x128xi32>
    %440 = arith.select %437, %427, %436 : vector<1x128xi1>, vector<1x128xf32>
    %cst_31 = arith.constant 0.000000e+00 : f32
    %441 = vector.broadcast %cst_31 : f32 to vector<4x6x128xf32>
    %c2_32 = arith.constant 2 : index
    %442 = memref.load %arg3[%c2_32] : memref<3xf32, #tpu.memory_space<smem>>
    %443 = vector.broadcast %442 : f32 to vector<4x6x128xf32>
    %444 = arith.addf %441, %443 : vector<4x6x128xf32>
    %c30 = arith.constant 30 : index
    %445 = memref.load %arg2[%c30] : memref<45xf32, #tpu.memory_space<smem>>
    %446 = vector.extract_strided_slice %0 {offsets = [0, 0, 0, 0], sizes = [1, 4, 6, 128], strides = [1, 1, 1, 1]} : vector<1x6x10x128xf32> to vector<1x4x6x128xf32>
    %447 = vector.shape_cast %446 : vector<1x4x6x128xf32> to vector<4x6x128xf32>
    %448 = vector.broadcast %445 : f32 to vector<4x6x128xf32>
    %449 = arith.mulf %447, %448 : vector<4x6x128xf32>
    %450 = arith.addf %444, %449 : vector<4x6x128xf32>
    %c31 = arith.constant 31 : index
    %451 = memref.load %arg2[%c31] : memref<45xf32, #tpu.memory_space<smem>>
    %452 = vector.extract_strided_slice %0 {offsets = [0, 0, 1, 0], sizes = [1, 4, 6, 128], strides = [1, 1, 1, 1]} : vector<1x6x10x128xf32> to vector<1x4x6x128xf32>
    %453 = vector.shape_cast %452 : vector<1x4x6x128xf32> to vector<4x6x128xf32>
    %454 = vector.broadcast %451 : f32 to vector<4x6x128xf32>
    %455 = arith.mulf %453, %454 : vector<4x6x128xf32>
    %456 = arith.addf %450, %455 : vector<4x6x128xf32>
    %c32 = arith.constant 32 : index
    %457 = memref.load %arg2[%c32] : memref<45xf32, #tpu.memory_space<smem>>
    %458 = vector.extract_strided_slice %0 {offsets = [0, 0, 2, 0], sizes = [1, 4, 6, 128], strides = [1, 1, 1, 1]} : vector<1x6x10x128xf32> to vector<1x4x6x128xf32>
    %459 = vector.shape_cast %458 : vector<1x4x6x128xf32> to vector<4x6x128xf32>
    %460 = vector.broadcast %457 : f32 to vector<4x6x128xf32>
    %461 = arith.mulf %459, %460 : vector<4x6x128xf32>
    %462 = arith.addf %456, %461 : vector<4x6x128xf32>
    %c33 = arith.constant 33 : index
    %463 = memref.load %arg2[%c33] : memref<45xf32, #tpu.memory_space<smem>>
    %464 = vector.extract_strided_slice %0 {offsets = [0, 0, 3, 0], sizes = [1, 4, 6, 128], strides = [1, 1, 1, 1]} : vector<1x6x10x128xf32> to vector<1x4x6x128xf32>
    %465 = vector.shape_cast %464 : vector<1x4x6x128xf32> to vector<4x6x128xf32>
    %466 = vector.broadcast %463 : f32 to vector<4x6x128xf32>
    %467 = arith.mulf %465, %466 : vector<4x6x128xf32>
    %468 = arith.addf %462, %467 : vector<4x6x128xf32>
    %c34 = arith.constant 34 : index
    %469 = memref.load %arg2[%c34] : memref<45xf32, #tpu.memory_space<smem>>
    %470 = vector.extract_strided_slice %0 {offsets = [0, 0, 4, 0], sizes = [1, 4, 6, 128], strides = [1, 1, 1, 1]} : vector<1x6x10x128xf32> to vector<1x4x6x128xf32>
    %471 = vector.shape_cast %470 : vector<1x4x6x128xf32> to vector<4x6x128xf32>
    %472 = vector.broadcast %469 : f32 to vector<4x6x128xf32>
    %473 = arith.mulf %471, %472 : vector<4x6x128xf32>
    %474 = arith.addf %468, %473 : vector<4x6x128xf32>
    %c35 = arith.constant 35 : index
    %475 = memref.load %arg2[%c35] : memref<45xf32, #tpu.memory_space<smem>>
    %476 = vector.extract_strided_slice %0 {offsets = [0, 1, 0, 0], sizes = [1, 4, 6, 128], strides = [1, 1, 1, 1]} : vector<1x6x10x128xf32> to vector<1x4x6x128xf32>
    %477 = vector.shape_cast %476 : vector<1x4x6x128xf32> to vector<4x6x128xf32>
    %478 = vector.broadcast %475 : f32 to vector<4x6x128xf32>
    %479 = arith.mulf %477, %478 : vector<4x6x128xf32>
    %480 = arith.addf %474, %479 : vector<4x6x128xf32>
    %c36 = arith.constant 36 : index
    %481 = memref.load %arg2[%c36] : memref<45xf32, #tpu.memory_space<smem>>
    %482 = vector.extract_strided_slice %0 {offsets = [0, 1, 1, 0], sizes = [1, 4, 6, 128], strides = [1, 1, 1, 1]} : vector<1x6x10x128xf32> to vector<1x4x6x128xf32>
    %483 = vector.shape_cast %482 : vector<1x4x6x128xf32> to vector<4x6x128xf32>
    %484 = vector.broadcast %481 : f32 to vector<4x6x128xf32>
    %485 = arith.mulf %483, %484 : vector<4x6x128xf32>
    %486 = arith.addf %480, %485 : vector<4x6x128xf32>
    %c37 = arith.constant 37 : index
    %487 = memref.load %arg2[%c37] : memref<45xf32, #tpu.memory_space<smem>>
    %488 = vector.extract_strided_slice %0 {offsets = [0, 1, 2, 0], sizes = [1, 4, 6, 128], strides = [1, 1, 1, 1]} : vector<1x6x10x128xf32> to vector<1x4x6x128xf32>
    %489 = vector.shape_cast %488 : vector<1x4x6x128xf32> to vector<4x6x128xf32>
    %490 = vector.broadcast %487 : f32 to vector<4x6x128xf32>
    %491 = arith.mulf %489, %490 : vector<4x6x128xf32>
    %492 = arith.addf %486, %491 : vector<4x6x128xf32>
    %c38 = arith.constant 38 : index
    %493 = memref.load %arg2[%c38] : memref<45xf32, #tpu.memory_space<smem>>
    %494 = vector.extract_strided_slice %0 {offsets = [0, 1, 3, 0], sizes = [1, 4, 6, 128], strides = [1, 1, 1, 1]} : vector<1x6x10x128xf32> to vector<1x4x6x128xf32>
    %495 = vector.shape_cast %494 : vector<1x4x6x128xf32> to vector<4x6x128xf32>
    %496 = vector.broadcast %493 : f32 to vector<4x6x128xf32>
    %497 = arith.mulf %495, %496 : vector<4x6x128xf32>
    %498 = arith.addf %492, %497 : vector<4x6x128xf32>
    %c39 = arith.constant 39 : index
    %499 = memref.load %arg2[%c39] : memref<45xf32, #tpu.memory_space<smem>>
    %500 = vector.extract_strided_slice %0 {offsets = [0, 1, 4, 0], sizes = [1, 4, 6, 128], strides = [1, 1, 1, 1]} : vector<1x6x10x128xf32> to vector<1x4x6x128xf32>
    %501 = vector.shape_cast %500 : vector<1x4x6x128xf32> to vector<4x6x128xf32>
    %502 = vector.broadcast %499 : f32 to vector<4x6x128xf32>
    %503 = arith.mulf %501, %502 : vector<4x6x128xf32>
    %504 = arith.addf %498, %503 : vector<4x6x128xf32>
    %c40 = arith.constant 40 : index
    %505 = memref.load %arg2[%c40] : memref<45xf32, #tpu.memory_space<smem>>
    %506 = vector.extract_strided_slice %0 {offsets = [0, 2, 0, 0], sizes = [1, 4, 6, 128], strides = [1, 1, 1, 1]} : vector<1x6x10x128xf32> to vector<1x4x6x128xf32>
    %507 = vector.shape_cast %506 : vector<1x4x6x128xf32> to vector<4x6x128xf32>
    %508 = vector.broadcast %505 : f32 to vector<4x6x128xf32>
    %509 = arith.mulf %507, %508 : vector<4x6x128xf32>
    %510 = arith.addf %504, %509 : vector<4x6x128xf32>
    %c41 = arith.constant 41 : index
    %511 = memref.load %arg2[%c41] : memref<45xf32, #tpu.memory_space<smem>>
    %512 = vector.extract_strided_slice %0 {offsets = [0, 2, 1, 0], sizes = [1, 4, 6, 128], strides = [1, 1, 1, 1]} : vector<1x6x10x128xf32> to vector<1x4x6x128xf32>
    %513 = vector.shape_cast %512 : vector<1x4x6x128xf32> to vector<4x6x128xf32>
    %514 = vector.broadcast %511 : f32 to vector<4x6x128xf32>
    %515 = arith.mulf %513, %514 : vector<4x6x128xf32>
    %516 = arith.addf %510, %515 : vector<4x6x128xf32>
    %c42 = arith.constant 42 : index
    %517 = memref.load %arg2[%c42] : memref<45xf32, #tpu.memory_space<smem>>
    %518 = vector.extract_strided_slice %0 {offsets = [0, 2, 2, 0], sizes = [1, 4, 6, 128], strides = [1, 1, 1, 1]} : vector<1x6x10x128xf32> to vector<1x4x6x128xf32>
    %519 = vector.shape_cast %518 : vector<1x4x6x128xf32> to vector<4x6x128xf32>
    %520 = vector.broadcast %517 : f32 to vector<4x6x128xf32>
    %521 = arith.mulf %519, %520 : vector<4x6x128xf32>
    %522 = arith.addf %516, %521 : vector<4x6x128xf32>
    %c43 = arith.constant 43 : index
    %523 = memref.load %arg2[%c43] : memref<45xf32, #tpu.memory_space<smem>>
    %524 = vector.extract_strided_slice %0 {offsets = [0, 2, 3, 0], sizes = [1, 4, 6, 128], strides = [1, 1, 1, 1]} : vector<1x6x10x128xf32> to vector<1x4x6x128xf32>
    %525 = vector.shape_cast %524 : vector<1x4x6x128xf32> to vector<4x6x128xf32>
    %526 = vector.broadcast %523 : f32 to vector<4x6x128xf32>
    %527 = arith.mulf %525, %526 : vector<4x6x128xf32>
    %528 = arith.addf %522, %527 : vector<4x6x128xf32>
    %c44 = arith.constant 44 : index
    %529 = memref.load %arg2[%c44] : memref<45xf32, #tpu.memory_space<smem>>
    %530 = vector.extract_strided_slice %0 {offsets = [0, 2, 4, 0], sizes = [1, 4, 6, 128], strides = [1, 1, 1, 1]} : vector<1x6x10x128xf32> to vector<1x4x6x128xf32>
    %531 = vector.shape_cast %530 : vector<1x4x6x128xf32> to vector<4x6x128xf32>
    %532 = vector.broadcast %529 : f32 to vector<4x6x128xf32>
    %533 = arith.mulf %531, %532 : vector<4x6x128xf32>
    %534 = arith.addf %528, %533 : vector<4x6x128xf32>
    %535 = vector.extract_strided_slice %534 {offsets = [0, 0, 0], sizes = [1, 1, 128], strides = [1, 1, 1]} : vector<4x6x128xf32> to vector<1x1x128xf32>
    %536 = vector.shape_cast %535 : vector<1x1x128xf32> to vector<1x128xf32>
    %537 = vector.extract_strided_slice %534 {offsets = [0, 1, 0], sizes = [1, 1, 128], strides = [1, 1, 1]} : vector<4x6x128xf32> to vector<1x1x128xf32>
    %538 = vector.shape_cast %537 : vector<1x1x128xf32> to vector<1x128xf32>
    %539 = vector.extract_strided_slice %534 {offsets = [1, 0, 0], sizes = [1, 1, 128], strides = [1, 1, 1]} : vector<4x6x128xf32> to vector<1x1x128xf32>
    %540 = vector.shape_cast %539 : vector<1x1x128xf32> to vector<1x128xf32>
    %541 = vector.extract_strided_slice %534 {offsets = [1, 1, 0], sizes = [1, 1, 128], strides = [1, 1, 1]} : vector<4x6x128xf32> to vector<1x1x128xf32>
    %542 = vector.shape_cast %541 : vector<1x1x128xf32> to vector<1x128xf32>
    %c0_i32_33 = arith.constant 0 : i32
    %543 = vector.broadcast %c0_i32_33 : i32 to vector<1x128xi32>
    %544 = arith.cmpf ogt, %538, %536 : vector<1x128xf32>
    %c1_i32_34 = arith.constant 1 : i32
    %545 = vector.broadcast %c1_i32_34 : i32 to vector<1x128xi32>
    %546 = arith.select %544, %545, %543 : vector<1x128xi1>, vector<1x128xi32>
    %547 = arith.select %544, %538, %536 : vector<1x128xi1>, vector<1x128xf32>
    %548 = arith.cmpf ogt, %540, %547 : vector<1x128xf32>
    %c6_i32_35 = arith.constant 6 : i32
    %549 = vector.broadcast %c6_i32_35 : i32 to vector<1x128xi32>
    %550 = arith.select %548, %549, %546 : vector<1x128xi1>, vector<1x128xi32>
    %551 = arith.select %548, %540, %547 : vector<1x128xi1>, vector<1x128xf32>
    %552 = arith.cmpf ogt, %542, %551 : vector<1x128xf32>
    %c7_i32_36 = arith.constant 7 : i32
    %553 = vector.broadcast %c7_i32_36 : i32 to vector<1x128xi32>
    %554 = arith.select %552, %553, %550 : vector<1x128xi1>, vector<1x128xi32>
    %555 = arith.select %552, %542, %551 : vector<1x128xi1>, vector<1x128xf32>
    %556 = vector.extract_strided_slice %534 {offsets = [0, 2, 0], sizes = [1, 1, 128], strides = [1, 1, 1]} : vector<4x6x128xf32> to vector<1x1x128xf32>
    %557 = vector.shape_cast %556 : vector<1x1x128xf32> to vector<1x128xf32>
    %558 = vector.extract_strided_slice %534 {offsets = [0, 3, 0], sizes = [1, 1, 128], strides = [1, 1, 1]} : vector<4x6x128xf32> to vector<1x1x128xf32>
    %559 = vector.shape_cast %558 : vector<1x1x128xf32> to vector<1x128xf32>
    %560 = vector.extract_strided_slice %534 {offsets = [1, 2, 0], sizes = [1, 1, 128], strides = [1, 1, 1]} : vector<4x6x128xf32> to vector<1x1x128xf32>
    %561 = vector.shape_cast %560 : vector<1x1x128xf32> to vector<1x128xf32>
    %562 = vector.extract_strided_slice %534 {offsets = [1, 3, 0], sizes = [1, 1, 128], strides = [1, 1, 1]} : vector<4x6x128xf32> to vector<1x1x128xf32>
    %563 = vector.shape_cast %562 : vector<1x1x128xf32> to vector<1x128xf32>
    %c2_i32_37 = arith.constant 2 : i32
    %564 = vector.broadcast %c2_i32_37 : i32 to vector<1x128xi32>
    %565 = arith.cmpf ogt, %559, %557 : vector<1x128xf32>
    %c3_i32_38 = arith.constant 3 : i32
    %566 = vector.broadcast %c3_i32_38 : i32 to vector<1x128xi32>
    %567 = arith.select %565, %566, %564 : vector<1x128xi1>, vector<1x128xi32>
    %568 = arith.select %565, %559, %557 : vector<1x128xi1>, vector<1x128xf32>
    %569 = arith.cmpf ogt, %561, %568 : vector<1x128xf32>
    %c8_i32_39 = arith.constant 8 : i32
    %570 = vector.broadcast %c8_i32_39 : i32 to vector<1x128xi32>
    %571 = arith.select %569, %570, %567 : vector<1x128xi1>, vector<1x128xi32>
    %572 = arith.select %569, %561, %568 : vector<1x128xi1>, vector<1x128xf32>
    %573 = arith.cmpf ogt, %563, %572 : vector<1x128xf32>
    %c9_i32_40 = arith.constant 9 : i32
    %574 = vector.broadcast %c9_i32_40 : i32 to vector<1x128xi32>
    %575 = arith.select %573, %574, %571 : vector<1x128xi1>, vector<1x128xi32>
    %576 = arith.select %573, %563, %572 : vector<1x128xi1>, vector<1x128xf32>
    %577 = vector.extract_strided_slice %534 {offsets = [0, 4, 0], sizes = [1, 1, 128], strides = [1, 1, 1]} : vector<4x6x128xf32> to vector<1x1x128xf32>
    %578 = vector.shape_cast %577 : vector<1x1x128xf32> to vector<1x128xf32>
    %579 = vector.extract_strided_slice %534 {offsets = [0, 5, 0], sizes = [1, 1, 128], strides = [1, 1, 1]} : vector<4x6x128xf32> to vector<1x1x128xf32>
    %580 = vector.shape_cast %579 : vector<1x1x128xf32> to vector<1x128xf32>
    %581 = vector.extract_strided_slice %534 {offsets = [1, 4, 0], sizes = [1, 1, 128], strides = [1, 1, 1]} : vector<4x6x128xf32> to vector<1x1x128xf32>
    %582 = vector.shape_cast %581 : vector<1x1x128xf32> to vector<1x128xf32>
    %583 = vector.extract_strided_slice %534 {offsets = [1, 5, 0], sizes = [1, 1, 128], strides = [1, 1, 1]} : vector<4x6x128xf32> to vector<1x1x128xf32>
    %584 = vector.shape_cast %583 : vector<1x1x128xf32> to vector<1x128xf32>
    %c4_i32_41 = arith.constant 4 : i32
    %585 = vector.broadcast %c4_i32_41 : i32 to vector<1x128xi32>
    %586 = arith.cmpf ogt, %580, %578 : vector<1x128xf32>
    %c5_i32_42 = arith.constant 5 : i32
    %587 = vector.broadcast %c5_i32_42 : i32 to vector<1x128xi32>
    %588 = arith.select %586, %587, %585 : vector<1x128xi1>, vector<1x128xi32>
    %589 = arith.select %586, %580, %578 : vector<1x128xi1>, vector<1x128xf32>
    %590 = arith.cmpf ogt, %582, %589 : vector<1x128xf32>
    %c10_i32_43 = arith.constant 10 : i32
    %591 = vector.broadcast %c10_i32_43 : i32 to vector<1x128xi32>
    %592 = arith.select %590, %591, %588 : vector<1x128xi1>, vector<1x128xi32>
    %593 = arith.select %590, %582, %589 : vector<1x128xi1>, vector<1x128xf32>
    %594 = arith.cmpf ogt, %584, %593 : vector<1x128xf32>
    %c11_i32_44 = arith.constant 11 : i32
    %595 = vector.broadcast %c11_i32_44 : i32 to vector<1x128xi32>
    %596 = arith.select %594, %595, %592 : vector<1x128xi1>, vector<1x128xi32>
    %597 = arith.select %594, %584, %593 : vector<1x128xi1>, vector<1x128xf32>
    %598 = vector.extract_strided_slice %534 {offsets = [2, 0, 0], sizes = [1, 1, 128], strides = [1, 1, 1]} : vector<4x6x128xf32> to vector<1x1x128xf32>
    %599 = vector.shape_cast %598 : vector<1x1x128xf32> to vector<1x128xf32>
    %600 = vector.extract_strided_slice %534 {offsets = [2, 1, 0], sizes = [1, 1, 128], strides = [1, 1, 1]} : vector<4x6x128xf32> to vector<1x1x128xf32>
    %601 = vector.shape_cast %600 : vector<1x1x128xf32> to vector<1x128xf32>
    %602 = vector.extract_strided_slice %534 {offsets = [3, 0, 0], sizes = [1, 1, 128], strides = [1, 1, 1]} : vector<4x6x128xf32> to vector<1x1x128xf32>
    %603 = vector.shape_cast %602 : vector<1x1x128xf32> to vector<1x128xf32>
    %604 = vector.extract_strided_slice %534 {offsets = [3, 1, 0], sizes = [1, 1, 128], strides = [1, 1, 1]} : vector<4x6x128xf32> to vector<1x1x128xf32>
    %605 = vector.shape_cast %604 : vector<1x1x128xf32> to vector<1x128xf32>
    %c12_i32_45 = arith.constant 12 : i32
    %606 = vector.broadcast %c12_i32_45 : i32 to vector<1x128xi32>
    %607 = arith.cmpf ogt, %601, %599 : vector<1x128xf32>
    %c13_i32_46 = arith.constant 13 : i32
    %608 = vector.broadcast %c13_i32_46 : i32 to vector<1x128xi32>
    %609 = arith.select %607, %608, %606 : vector<1x128xi1>, vector<1x128xi32>
    %610 = arith.select %607, %601, %599 : vector<1x128xi1>, vector<1x128xf32>
    %611 = arith.cmpf ogt, %603, %610 : vector<1x128xf32>
    %c18_i32_47 = arith.constant 18 : i32
    %612 = vector.broadcast %c18_i32_47 : i32 to vector<1x128xi32>
    %613 = arith.select %611, %612, %609 : vector<1x128xi1>, vector<1x128xi32>
    %614 = arith.select %611, %603, %610 : vector<1x128xi1>, vector<1x128xf32>
    %615 = arith.cmpf ogt, %605, %614 : vector<1x128xf32>
    %c19_i32_48 = arith.constant 19 : i32
    %616 = vector.broadcast %c19_i32_48 : i32 to vector<1x128xi32>
    %617 = arith.select %615, %616, %613 : vector<1x128xi1>, vector<1x128xi32>
    %618 = arith.select %615, %605, %614 : vector<1x128xi1>, vector<1x128xf32>
    %619 = vector.extract_strided_slice %534 {offsets = [2, 2, 0], sizes = [1, 1, 128], strides = [1, 1, 1]} : vector<4x6x128xf32> to vector<1x1x128xf32>
    %620 = vector.shape_cast %619 : vector<1x1x128xf32> to vector<1x128xf32>
    %621 = vector.extract_strided_slice %534 {offsets = [2, 3, 0], sizes = [1, 1, 128], strides = [1, 1, 1]} : vector<4x6x128xf32> to vector<1x1x128xf32>
    %622 = vector.shape_cast %621 : vector<1x1x128xf32> to vector<1x128xf32>
    %623 = vector.extract_strided_slice %534 {offsets = [3, 2, 0], sizes = [1, 1, 128], strides = [1, 1, 1]} : vector<4x6x128xf32> to vector<1x1x128xf32>
    %624 = vector.shape_cast %623 : vector<1x1x128xf32> to vector<1x128xf32>
    %625 = vector.extract_strided_slice %534 {offsets = [3, 3, 0], sizes = [1, 1, 128], strides = [1, 1, 1]} : vector<4x6x128xf32> to vector<1x1x128xf32>
    %626 = vector.shape_cast %625 : vector<1x1x128xf32> to vector<1x128xf32>
    %c14_i32_49 = arith.constant 14 : i32
    %627 = vector.broadcast %c14_i32_49 : i32 to vector<1x128xi32>
    %628 = arith.cmpf ogt, %622, %620 : vector<1x128xf32>
    %c15_i32_50 = arith.constant 15 : i32
    %629 = vector.broadcast %c15_i32_50 : i32 to vector<1x128xi32>
    %630 = arith.select %628, %629, %627 : vector<1x128xi1>, vector<1x128xi32>
    %631 = arith.select %628, %622, %620 : vector<1x128xi1>, vector<1x128xf32>
    %632 = arith.cmpf ogt, %624, %631 : vector<1x128xf32>
    %c20_i32_51 = arith.constant 20 : i32
    %633 = vector.broadcast %c20_i32_51 : i32 to vector<1x128xi32>
    %634 = arith.select %632, %633, %630 : vector<1x128xi1>, vector<1x128xi32>
    %635 = arith.select %632, %624, %631 : vector<1x128xi1>, vector<1x128xf32>
    %636 = arith.cmpf ogt, %626, %635 : vector<1x128xf32>
    %c21_i32_52 = arith.constant 21 : i32
    %637 = vector.broadcast %c21_i32_52 : i32 to vector<1x128xi32>
    %638 = arith.select %636, %637, %634 : vector<1x128xi1>, vector<1x128xi32>
    %639 = arith.select %636, %626, %635 : vector<1x128xi1>, vector<1x128xf32>
    %640 = vector.extract_strided_slice %534 {offsets = [2, 4, 0], sizes = [1, 1, 128], strides = [1, 1, 1]} : vector<4x6x128xf32> to vector<1x1x128xf32>
    %641 = vector.shape_cast %640 : vector<1x1x128xf32> to vector<1x128xf32>
    %642 = vector.extract_strided_slice %534 {offsets = [2, 5, 0], sizes = [1, 1, 128], strides = [1, 1, 1]} : vector<4x6x128xf32> to vector<1x1x128xf32>
    %643 = vector.shape_cast %642 : vector<1x1x128xf32> to vector<1x128xf32>
    %644 = vector.extract_strided_slice %534 {offsets = [3, 4, 0], sizes = [1, 1, 128], strides = [1, 1, 1]} : vector<4x6x128xf32> to vector<1x1x128xf32>
    %645 = vector.shape_cast %644 : vector<1x1x128xf32> to vector<1x128xf32>
    %646 = vector.extract_strided_slice %534 {offsets = [3, 5, 0], sizes = [1, 1, 128], strides = [1, 1, 1]} : vector<4x6x128xf32> to vector<1x1x128xf32>
    %647 = vector.shape_cast %646 : vector<1x1x128xf32> to vector<1x128xf32>
    %c16_i32_53 = arith.constant 16 : i32
    %648 = vector.broadcast %c16_i32_53 : i32 to vector<1x128xi32>
    %649 = arith.cmpf ogt, %643, %641 : vector<1x128xf32>
    %c17_i32_54 = arith.constant 17 : i32
    %650 = vector.broadcast %c17_i32_54 : i32 to vector<1x128xi32>
    %651 = arith.select %649, %650, %648 : vector<1x128xi1>, vector<1x128xi32>
    %652 = arith.select %649, %643, %641 : vector<1x128xi1>, vector<1x128xf32>
    %653 = arith.cmpf ogt, %645, %652 : vector<1x128xf32>
    %c22_i32_55 = arith.constant 22 : i32
    %654 = vector.broadcast %c22_i32_55 : i32 to vector<1x128xi32>
    %655 = arith.select %653, %654, %651 : vector<1x128xi1>, vector<1x128xi32>
    %656 = arith.select %653, %645, %652 : vector<1x128xi1>, vector<1x128xf32>
    %657 = arith.cmpf ogt, %647, %656 : vector<1x128xf32>
    %c23_i32_56 = arith.constant 23 : i32
    %658 = vector.broadcast %c23_i32_56 : i32 to vector<1x128xi32>
    %659 = arith.select %657, %658, %655 : vector<1x128xi1>, vector<1x128xi32>
    %660 = arith.select %657, %647, %656 : vector<1x128xi1>, vector<1x128xf32>
    %661 = tpu.concatenate %115, %136, %157, %178, %199, %220, %335, %356, %377, %398, %419, %440, %555, %576, %597, %618 in 0 : vector<1x128xf32>, vector<1x128xf32>, vector<1x128xf32>, vector<1x128xf32>, vector<1x128xf32>, vector<1x128xf32>, vector<1x128xf32>, vector<1x128xf32>, vector<1x128xf32>, vector<1x128xf32>, vector<1x128xf32>, vector<1x128xf32>, vector<1x128xf32>, vector<1x128xf32>, vector<1x128xf32>, vector<1x128xf32> -> vector<16x128xf32>
    %662 = tpu.concatenate %639, %660 in 0 : vector<1x128xf32>, vector<1x128xf32> -> vector<2x128xf32>
    %663 = tpu.concatenate %661, %662 in 0 : vector<16x128xf32>, vector<2x128xf32> -> vector<18x128xf32>
    %c0_57 = arith.constant 0 : index
    %c0_58 = arith.constant 0 : index
    %664 = vector.load %arg4[%c0_57, %c0_58] : memref<18x128xf32, #tpu.memory_space<vmem>>, vector<18x128xf32>
    tpu.vector_store %arg4[%c0_57, %c0_58], %663 {strides = array<i32>} : memref<18x128xf32, #tpu.memory_space<vmem>>, vector<18x128xf32>,
    %665 = tpu.concatenate %114, %135, %156, %177, %198, %219, %334, %355, %376, %397, %418, %439, %554, %575, %596, %617 in 0 : vector<1x128xi32>, vector<1x128xi32>, vector<1x128xi32>, vector<1x128xi32>, vector<1x128xi32>, vector<1x128xi32>, vector<1x128xi32>, vector<1x128xi32>, vector<1x128xi32>, vector<1x128xi32>, vector<1x128xi32>, vector<1x128xi32>, vector<1x128xi32>, vector<1x128xi32>, vector<1x128xi32>, vector<1x128xi32> -> vector<16x128xi32>
    %666 = tpu.concatenate %638, %659 in 0 : vector<1x128xi32>, vector<1x128xi32> -> vector<2x128xi32>
    %667 = tpu.concatenate %665, %666 in 0 : vector<16x128xi32>, vector<2x128xi32> -> vector<18x128xi32>
    %c0_59 = arith.constant 0 : index
    %c0_60 = arith.constant 0 : index
    %668 = vector.load %arg5[%c0_59, %c0_60] : memref<18x128xi32, #tpu.memory_space<vmem>>, vector<18x128xi32>
    tpu.vector_store %arg5[%c0_59, %c0_60], %667 {strides = array<i32>} : memref<18x128xi32, #tpu.memory_space<vmem>>, vector<18x128xi32>,
    return
  }
  func.func @transform_0(%arg0: i32) -> (i32, i32, i32, i32) {
    %c0_i32 = arith.constant 0 : i32
    %c0_i32_0 = arith.constant 0 : i32
    %c0_i32_1 = arith.constant 0 : i32
    %c0_i32_2 = arith.constant 0 : i32
    return %c0_i32, %c0_i32_0, %c0_i32_1, %arg0 : i32, i32, i32, i32
  }
  func.func @transform_1(%arg0: i32) -> i32 {
    %c0_i32 = arith.constant 0 : i32
    %c0_i32_0 = arith.constant 0 : i32
    return %c0_i32 : i32
  }
  func.func @transform_2(%arg0: i32) -> i32 {
    %c0_i32 = arith.constant 0 : i32
    %c0_i32_0 = arith.constant 0 : i32
    return %c0_i32 : i32
  }
  func.func @transform_3(%arg0: i32) -> (i32, i32) {
    %c0_i32 = arith.constant 0 : i32
    %c0_i32_0 = arith.constant 0 : i32
    return %c0_i32, %arg0 : i32, i32
  }
  func.func @transform_4(%arg0: i32) -> (i32, i32) {
    %c0_i32 = arith.constant 0 : i32
    %c0_i32_0 = arith.constant 0 : i32
    return %c0_i32, %arg0 : i32, i32
  }
}

</mosaic_0001>

<bundles_post_ra>
// kernel: tpu_custom_call.1
= control target key start
LH: loop header
LB: loop body
LE: loop exit
PB: predicated region body
PF: predicated region fallthrough
CT: control target
= control target key end

     0   :  { %10 = vsyncpa [#allocation4], 0  ;;  %s2579_s0 = inlined_call_operand.vmem [shape: f32[1,6,10,128], index: 0, kind: input, shape index: {}]   ;;  %s2580_s1 = inlined_call_operand.vmem [shape: f32[45], index: 1, kind: input, shape index: {}]   ;;  %s2581_s2 = inlined_call_operand.vmem [shape: f32[3], index: 2, kind: input, shape index: {}]   ;;  %s2582_s3 = inlined_call_operand.hbm [shape: f32[18,128], index: 3, kind: output, shape index: {0}]   ;;  %s2583_s4 = inlined_call_operand.hbm [shape: s32[18,128], index: 4, kind: output, shape index: {1}]  }
   0x1   :  { %11 = vsyncpa [#allocation6], 0 }
   0x2   :  { %12 = vsyncpa [#allocation3], 0 }
   0x3   :  { %13 = vsyncpa [#allocation9], 0  ;;  %s22_s17 = sshll.u32 %s2580_s1, 4  ;;  %s32_s20 = sshll.u32 %s2581_s2, 4  ;;  %s23_s17 = int_to_ptr.vmem [resolvable:$true] %s22_s17  ;;  %s33_s20 = int_to_ptr.vmem [resolvable:$true] %s32_s20 }
   0x4   :  { %s1615_s21 = scalar_lea.vmem %s23_s17, 16  ;;  %p1620_p1 = scmp.lt.s32.totalorder %s23_s17, %s23_s17 }
   0x5   :  { %p1616_p0 = scmp.ne.s32.totalorder %s23_s17, %s1615_s21  ;;  %p1621_p2 = scmp.lt.s32.totalorder %s1615_s21, %s1615_s21 }
   0x7   :  { %p1622_p3 = por %p1621_p2, %p1620_p1 }
   0x9   :  { %p1623_p4 = pnand %p1622_p3, %p1616_p0 }
   0xb   :  { %1626 = shalt.err (!%p1623_p4)
}
   0xc   :  { %s1687_s22 = smov [#allocation2]   ;;  %s1627_s23 = scalar_lea.vmem %s33_s20, 16 }
   0xd   :  { %25 = dma.vmem_to_smem %s23_s17, 16, %s1687_s22, [#allocation4]  }
   0xe   :  { %p1628_p5 = scmp.ne.s32.totalorder %s33_s20, %s1627_s23  ;;  %p1632_p6 = scmp.lt.s32.totalorder %s33_s20, %s33_s20 }
   0xf   :  { %p1633_p7 = scmp.lt.s32.totalorder %s1627_s23, %s1627_s23 }
  0x11   :  { %p1634_p8 = por %p1633_p7, %p1632_p6 }
  0x13   :  { %p1635_p9 = pnand %p1634_p8, %p1628_p5 }
  0x15   :  { %1638 = shalt.err (!%p1635_p9)
}
  0x16   :  { %s1688_s1 = smov [#allocation5]  }
  0x17   :  { %35 = dma.vmem_to_smem %s33_s20, 16, %s1688_s1, [#allocation6]  }
  0x18   :  { %1679 = dma.done.wait [#allocation4], 16  }
  0x19   :  { %1680 = vsyncadd [#allocation4], 4294967280 }
  0x1a   :  { %1681 = dma.done.wait [#allocation6], 16  }
  0x1b   :  { %1682 = vsyncadd [#allocation6], 4294967280 }
  0x1c   :  { %42 = sfence }
  0x1d   :  { %s55_s2 = sld [smem:[#allocation5]]  ;;  %v1733_v0 = vld [vmem:[%s2579_s0] sm:$0xff]  ;;  %v1738_v1 = vld [vmem:[%s2579_s0 + $0x10] sm:$0xff]  ;;  %vm130_vm0 = vcmask 1044480   ;;  %v1761_v26 = vld [vmem:[%s2579_s0 + $0x8] sm:$0x3] }
  0x1e   :  { %s58_s24 = sld [smem:[#allocation2]]  ;;  %v1743_v2 = vld [vmem:[%s2579_s0 + $0x20] sm:$0xff]  ;;  %v1748_v3 = vld [vmem:[%s2579_s0 + $0x30] sm:$0xff]  ;;  %v1766_v27 = vld [vmem:[%s2579_s0 + $0x18] sm:$0x3]  ;;  %vm169_vm1 = vcmask 1043456  }
  0x1f   :  { %s1545_s25 = sld [smem:[#allocation2 + $0x1]]  ;;  %v1775_v32 = vld [vmem:[%s2579_s0 + $0x28] sm:$0x3]  ;;  %v1780_v37 = vld [vmem:[%s2579_s0 + $0x38] sm:$0x3]  ;;  %vm1450_vm15 = vcmask 1040384  }
  0x20   :  { %s1546_s28 = sld [smem:[#allocation2 + $0x2]] }
  0x21   :  { %s1547_s9 = sld [smem:[#allocation2 + $0x3]] }
  0x22   :  { %s1548_s10 = sld [smem:[#allocation2 + $0x4]] }
  0x23   :  { %v56_v4 = vstv %s55_s2  ;;  %s1790_s19 = sld [smem:[#allocation2 + $0x5]] }
  0x24   :  { %v59_v5 = vstv %s58_s24  ;;  %s1792_s20 = sld [smem:[#allocation2 + $0x6]] }
  0x25   :  { %v60_v6 = vmul.f32 %v59_v5, %v1733_v0  ;;  %v61_v7 = vmul.f32 %v59_v5, %v1738_v1  ;;  %v62_v8 = vmul.f32 %v59_v5, %v1743_v2  ;;  %v63_v9 = vmul.f32 %v59_v5, %v1748_v3  ;;  %s1806_s21 = sld [smem:[#allocation2 + $0x7]] }
  0x26   :  { %v69_v10 = vstv %s1545_s25  ;;  %v91_v19 = vstv %s1546_s28  ;;  %s1808_s22 = sld [smem:[#allocation2 + $0x8]] }
  0x27   :  { %v64_v11 = vadd.f32 %v60_v6, %v56_v4  ;;  %v65_v12 = vadd.f32 %v61_v7, %v56_v4  ;;  %v66_v13 = vadd.f32 %v62_v8, %v56_v4  ;;  %v67_v14 = vadd.f32 %v63_v9, %v56_v4  ;;  %s1831_s2 = sld [smem:[#allocation2 + $0x9]] }
  0x28   :  { %v70_v15 = vmul.f32 %v69_v10, %v1733_v0  ;;  %v71_v16 = vmul.f32 %v69_v10, %v1738_v1  ;;  %v72_v17 = vmul.f32 %v69_v10, %v1743_v2  ;;  %v73_v18 = vmul.f32 %v69_v10, %v1748_v3  ;;  %s1835_s24 = sld [smem:[#allocation2 + $0xa]] }
  0x29   :  { %v113_v20 = vstv %s1547_s9  ;;  %v152_v21 = vstv %s1548_s10  ;;  %v92_v28 = vmul.f32 %v91_v19, %v1733_v0  ;;  %v93_v29 = vmul.f32 %v91_v19, %v1738_v1  ;;  %s1858_s27 = sld [smem:[#allocation2 + $0xb]] }
  0x2a   :  { %v78_v22 = vrot.slane %v70_v15, 1  ;;  %v79_v23 = vrot.slane %v71_v16, 1  ;;  %v80_v24 = vrot.slane %v72_v17, 1  ;;  %v81_v25 = vrot.slane %v73_v18, 1  ;;  %s1866_s28 = sld [smem:[#allocation2 + $0xc]] }
  0x2b   :  { %v94_v30 = vmul.f32 %v91_v19, %v1743_v2  ;;  %v95_v31 = vmul.f32 %v91_v19, %v1748_v3  ;;  %v100_v38 = vrot.slane %v92_v28, 2  ;;  %v101_v39 = vrot.slane %v93_v29, 2  ;;  %v1813_v29 = vld [vmem:[%s2579_s0 + $0x40] sm:$0xff]  ;;  %s1882_s5 = sld [smem:[#allocation2 + $0xd]] }
  0x2c   :  { %v86_v33 = vadd.f32 %v78_v22, %v64_v11  ;;  %v87_v34 = vadd.f32 %v79_v23, %v65_v12  ;;  %v88_v35 = vadd.f32 %v80_v24, %v66_v13  ;;  %v89_v36 = vadd.f32 %v81_v25, %v67_v14  ;;  %s1886_s6 = sld [smem:[#allocation2 + $0xe]] }
  0x2d   :  { %v102_v40 = vrot.slane %v94_v30, 2  ;;  %v103_v41 = vrot.slane %v95_v31, 2  ;;  %v114_v42 = vmul.f32 %v113_v20, %v1733_v0  ;;  %v115_v43 = vmul.f32 %v113_v20, %v1761_v26  ;;  %s1912_s9 = sld [smem:[#allocation2 + $0xf]] }
  0x2e   :  { %v116_v44 = vmul.f32 %v113_v20, %v1738_v1  ;;  %v117_v45 = vmul.f32 %v113_v20, %v1766_v27  ;;  %v108_v46 = vadd.f32 %v100_v38, %v86_v33  ;;  %v109_v47 = vadd.f32 %v101_v39, %v87_v34  ;;  %s1916_s10 = sld [smem:[#allocation5 + $0x1]] }
  0x2f   :  { %v110_v48 = vadd.f32 %v102_v40, %v88_v35  ;;  %v111_v49 = vadd.f32 %v103_v41, %v89_v36  ;;  %v118_v50 = vmul.f32 %v113_v20, %v1743_v2  ;;  %v119_v51 = vmul.f32 %v113_v20, %v1775_v32  ;;  %s1561_s11 = sld [smem:[#allocation2 + $0x10]] }
  0x30   :  { %v120_v52 = vmul.f32 %v113_v20, %v1748_v3  ;;  %v121_v53 = vmul.f32 %v113_v20, %v1780_v37  ;;  %v131_v54 = vrot.slane %v114_v42, 3  ;;  %v132_v55 = vrot.slane %v115_v43, 3  ;;  %s1961_s12 = sld [smem:[#allocation2 + $0x11]] }
  0x31   :  { %v134_v56 = vrot.slane %v116_v44, 3  ;;  %v135_v57 = vrot.slane %v117_v45, 3  ;;  %v137_v58 = vrot.slane %v118_v50, 3  ;;  %v138_v59 = vrot.slane %v119_v51, 3  ;;  %s1964_s13 = sld [smem:[#allocation2 + $0x12]] }
  0x32   :  { %v140_v60 = vrot.slane %v120_v52, 3  ;;  %v141_v61 = vrot.slane %v121_v53, 3  ;;  %v133_v62 = vsel %vm130_vm0, %v131_v54, %v132_v55  ;;  %v153_v4 = vmul.f32 %v152_v21, %v1733_v0  ;;  %s1969_s14 = sld [smem:[#allocation2 + $0x13]] }
  0x33   :  { %v136_v63 = vsel %vm130_vm0, %v134_v56, %v135_v57  ;;  %v154_v5 = vmul.f32 %v152_v21, %v1761_v26  ;;  %v139_v6 = vsel %vm130_vm0, %v137_v58, %v138_v59  ;;  %v147_v8 = vadd.f32 %v133_v62, %v108_v46  ;;  %s2031_s15 = sld [smem:[#allocation2 + $0x14]] }
  0x34   :  { %v142_v7 = vsel %vm130_vm0, %v140_v60, %v141_v61  ;;  %v148_v9 = vadd.f32 %v136_v63, %v109_v47  ;;  %v149_v10 = vadd.f32 %v139_v6, %v110_v48  ;;  %v155_v12 = vmul.f32 %v152_v21, %v1738_v1  ;;  %s2033_s16 = sld [smem:[#allocation2 + $0x15]] }
  0x35   :  { %v150_v11 = vadd.f32 %v142_v7, %v111_v49  ;;  %v156_v13 = vmul.f32 %v152_v21, %v1766_v27  ;;  %v157_v14 = vmul.f32 %v152_v21, %v1743_v2  ;;  %v158_v15 = vmul.f32 %v152_v21, %v1775_v32  ;;  %v1842_v7 = vld [vmem:[%s2579_s0 + $0x48] sm:$0x3]  ;;  %s2047_s17 = sld [smem:[#allocation2 + $0x16]] }
  0x36   :  { %v159_v16 = vmul.f32 %v152_v21, %v1748_v3  ;;  %v160_v17 = vmul.f32 %v152_v21, %v1780_v37  ;;  %v170_v18 = vrot.slane %v153_v4, 4  ;;  %v171_v19 = vrot.slane %v154_v5, 4  ;;  %s2049_s18 = sld [smem:[#allocation2 + $0x17]] }
  0x37   :  { %v173_v20 = vrot.slane %v155_v12, 4  ;;  %v174_v22 = vrot.slane %v156_v13, 4  ;;  %v176_v23 = vrot.slane %v157_v14, 4  ;;  %v177_v24 = vrot.slane %v158_v15, 4  ;;  %s2174_s7 = sld [smem:[#allocation2 + $0x1f]] }
  0x38   :  { %v179_v25 = vrot.slane %v159_v16, 4  ;;  %v180_v28 = vrot.slane %v160_v17, 4  ;;  %v172_v30 = vsel %vm169_vm1, %v170_v18, %v171_v19  ;;  %v191_v31 = vstv %s1790_s19  ;;  %s2067_s19 = sld [smem:[#allocation2 + $0x18]] }
  0x39   :  { %v175_v21 = vsel %vm169_vm1, %v173_v20, %v174_v22  ;;  %v201_v33 = vstv %s1792_s20  ;;  %v178_v34 = vsel %vm169_vm1, %v176_v23, %v177_v24  ;;  %v186_v36 = vadd.f32 %v172_v30, %v147_v8  ;;  %s2071_s20 = sld [smem:[#allocation2 + $0x19]] }
  0x3a   :  { %v181_v35 = vsel %vm169_vm1, %v179_v25, %v180_v28  ;;  %v187_v38 = vadd.f32 %v175_v21, %v148_v9  ;;  %v188_v39 = vadd.f32 %v178_v34, %v149_v10  ;;  %v192_v41 = vmul.f32 %v191_v31, %v1738_v1  ;;  %s2391_s29 = sld [smem:[#allocation2 + $0x2b]] }
  0x3b   :  { %v189_v40 = vadd.f32 %v181_v35, %v150_v11  ;;  %v193_v42 = vmul.f32 %v191_v31, %v1743_v2  ;;  %v194_v43 = vmul.f32 %v191_v31, %v1748_v3  ;;  %v195_v44 = vmul.f32 %v191_v31, %v1813_v29 }
  0x3c   :  { %v202_v45 = vmul.f32 %v201_v33, %v1738_v1  ;;  %v203_v46 = vmul.f32 %v201_v33, %v1743_v2  ;;  %v196_v47 = vadd.f32 %v192_v41, %v186_v36  ;;  %v204_v49 = vmul.f32 %v201_v33, %v1748_v3 }
  0x3d   :  { %v197_v48 = vadd.f32 %v193_v42, %v187_v38  ;;  %v205_v50 = vmul.f32 %v201_v33, %v1813_v29  ;;  %v198_v51 = vadd.f32 %v194_v43, %v188_v39  ;;  %v199_v52 = vadd.f32 %v195_v44, %v189_v40 }
  0x3e   :  { %v210_v53 = vrot.slane %v202_v45, 1  ;;  %v211_v54 = vrot.slane %v203_v46, 1  ;;  %v212_v55 = vrot.slane %v204_v49, 1  ;;  %v223_v57 = vstv %s1806_s21  ;;  %s2089_s21 = sld [smem:[#allocation2 + $0x1a]] }
  0x3f   :  { %v213_v56 = vrot.slane %v205_v50, 1  ;;  %v245_v58 = vstv %s1808_s22  ;;  %v224_v61 = vmul.f32 %v223_v57, %v1738_v1  ;;  %v225_v62 = vmul.f32 %v223_v57, %v1743_v2  ;;  %s2097_s22 = sld [smem:[#allocation2 + $0x1b]] }
  0x40   :  { %v218_v59 = vadd.f32 %v210_v53, %v196_v47  ;;  %v219_v60 = vadd.f32 %v211_v54, %v197_v48  ;;  %v220_v63 = vadd.f32 %v212_v55, %v198_v51  ;;  %v226_v5 = vmul.f32 %v223_v57, %v1748_v3 }
  0x41   :  { %v221_v4 = vadd.f32 %v213_v56, %v199_v52  ;;  %v227_v6 = vmul.f32 %v223_v57, %v1813_v29  ;;  %v232_v8 = vrot.slane %v224_v61, 2  ;;  %v233_v9 = vrot.slane %v225_v62, 2  ;;  %v1873_v61 = vld [vmem:[%s2579_s0 + $0x50] sm:$0xff] }
  0x42   :  { %v246_v10 = vmul.f32 %v245_v58, %v1738_v1  ;;  %v247_v11 = vmul.f32 %v245_v58, %v1766_v27  ;;  %v234_v12 = vrot.slane %v226_v5, 2  ;;  %v248_v14 = vmul.f32 %v245_v58, %v1743_v2 }
  0x43   :  { %v235_v13 = vrot.slane %v227_v6, 2  ;;  %v249_v15 = vmul.f32 %v245_v58, %v1775_v32  ;;  %v240_v16 = vadd.f32 %v232_v8, %v218_v59  ;;  %v241_v17 = vadd.f32 %v233_v9, %v219_v60 }
  0x44   :  { %v250_v18 = vmul.f32 %v245_v58, %v1748_v3  ;;  %v251_v19 = vmul.f32 %v245_v58, %v1780_v37  ;;  %v242_v20 = vadd.f32 %v234_v12, %v220_v63  ;;  %v252_v23 = vmul.f32 %v245_v58, %v1813_v29 }
  0x45   :  { %v243_v22 = vadd.f32 %v235_v13, %v221_v4  ;;  %v253_v24 = vmul.f32 %v245_v58, %v1842_v7  ;;  %v262_v25 = vrot.slane %v246_v10, 3  ;;  %v263_v28 = vrot.slane %v247_v11, 3 }
  0x46   :  { %v265_v30 = vrot.slane %v248_v14, 3  ;;  %v266_v21 = vrot.slane %v249_v15, 3  ;;  %v268_v31 = vrot.slane %v250_v18, 3  ;;  %v269_v33 = vrot.slane %v251_v19, 3 }
  0x47   :  { %v271_v34 = vrot.slane %v252_v23, 3  ;;  %v272_v35 = vrot.slane %v253_v24, 3  ;;  %v264_v36 = vsel %vm130_vm0, %v262_v25, %v263_v28  ;;  %v283_v39 = vstv %s1831_s2  ;;  %s2113_s2 = sld [smem:[#allocation2 + $0x1c]] }
  0x48   :  { %v267_v38 = vsel %vm130_vm0, %v265_v30, %v266_v21  ;;  %v321_v40 = vstv %s1835_s24  ;;  %v270_v41 = vsel %vm130_vm0, %v268_v31, %v269_v33  ;;  %v278_v43 = vadd.f32 %v264_v36, %v240_v16  ;;  %s2117_s24 = sld [smem:[#allocation2 + $0x1d]] }
  0x49   :  { %v273_v42 = vsel %vm130_vm0, %v271_v34, %v272_v35  ;;  %v279_v44 = vadd.f32 %v267_v38, %v241_v17  ;;  %v280_v45 = vadd.f32 %v270_v41, %v242_v20  ;;  %v284_v47 = vmul.f32 %v283_v39, %v1738_v1 }
  0x4a   :  { %v281_v46 = vadd.f32 %v273_v42, %v243_v22  ;;  %v285_v48 = vmul.f32 %v283_v39, %v1766_v27  ;;  %v286_v49 = vmul.f32 %v283_v39, %v1743_v2  ;;  %v287_v50 = vmul.f32 %v283_v39, %v1775_v32 }
  0x4b   :  { %v288_v51 = vmul.f32 %v283_v39, %v1748_v3  ;;  %v289_v52 = vmul.f32 %v283_v39, %v1780_v37  ;;  %v290_v53 = vmul.f32 %v283_v39, %v1813_v29  ;;  %v291_v54 = vmul.f32 %v283_v39, %v1842_v7 }
  0x4c   :  { %v300_v55 = vrot.slane %v284_v47, 4  ;;  %v301_v56 = vrot.slane %v285_v48, 4  ;;  %v303_v57 = vrot.slane %v286_v49, 4  ;;  %v304_v58 = vrot.slane %v287_v50, 4  ;;  %v1900_v47 = vld [vmem:[%s2579_s0 + $0x58] sm:$0x3] }
  0x4d   :  { %v306_v59 = vrot.slane %v288_v51, 4  ;;  %v307_v60 = vrot.slane %v289_v52, 4  ;;  %v309_v63 = vrot.slane %v290_v53, 4  ;;  %v310_v4 = vrot.slane %v291_v54, 4 }
  0x4e   :  { %v302_v62 = vsel %vm169_vm1, %v300_v55, %v301_v56  ;;  %v322_v5 = vmul.f32 %v321_v40, %v1743_v2  ;;  %v305_v6 = vsel %vm169_vm1, %v303_v57, %v304_v58  ;;  %v323_v10 = vmul.f32 %v321_v40, %v1748_v3 }
  0x4f   :  { %v308_v8 = vsel %vm169_vm1, %v306_v59, %v307_v60  ;;  %v316_v9 = vadd.f32 %v302_v62, %v278_v43  ;;  %v311_v11 = vsel %vm169_vm1, %v309_v63, %v310_v4  ;;  %v317_v12 = vadd.f32 %v305_v6, %v279_v44 }
  0x50   :  { %v318_v13 = vadd.f32 %v308_v8, %v280_v45  ;;  %v324_v14 = vmul.f32 %v321_v40, %v1813_v29  ;;  %v319_v15 = vadd.f32 %v311_v11, %v281_v46  ;;  %v325_v16 = vmul.f32 %v321_v40, %v1873_v61 }
  0x51   :  { %v326_v17 = vadd.f32 %v322_v5, %v316_v9  ;;  %v331_v18 = vstv %s1858_s27  ;;  %v327_v19 = vadd.f32 %v323_v10, %v317_v12  ;;  %v353_v30 = vstv %s1866_s28  ;;  %s2372_s27 = sld [smem:[#allocation2 + $0x29]] }
  0x52   :  { %v328_v20 = vadd.f32 %v324_v14, %v318_v13  ;;  %v332_v22 = vmul.f32 %v331_v18, %v1743_v2  ;;  %v333_v23 = vmul.f32 %v331_v18, %v1748_v3  ;;  %v329_v24 = vadd.f32 %v325_v16, %v319_v15  ;;  %s2380_s28 = sld [smem:[#allocation2 + $0x2a]] }
  0x53   :  { %v334_v25 = vmul.f32 %v331_v18, %v1813_v29  ;;  %v335_v28 = vmul.f32 %v331_v18, %v1873_v61  ;;  %v354_v33 = vmul.f32 %v353_v30, %v1743_v2  ;;  %v355_v34 = vmul.f32 %v353_v30, %v1748_v3 }
  0x54   :  { %v340_v21 = vrot.slane %v332_v22, 1  ;;  %v341_v31 = vrot.slane %v333_v23, 1  ;;  %v356_v38 = vmul.f32 %v353_v30, %v1813_v29  ;;  %v357_v39 = vmul.f32 %v353_v30, %v1873_v61 }
  0x55   :  { %v342_v35 = vrot.slane %v334_v25, 1  ;;  %v343_v36 = vrot.slane %v335_v28, 1  ;;  %v362_v42 = vrot.slane %v354_v33, 2  ;;  %v363_v43 = vrot.slane %v355_v34, 2 }
  0x56   :  { %v348_v40 = vadd.f32 %v340_v21, %v326_v17  ;;  %v349_v41 = vadd.f32 %v341_v31, %v327_v19  ;;  %v364_v46 = vrot.slane %v356_v38, 2  ;;  %v365_v48 = vrot.slane %v357_v39, 2 }
  0x57   :  { %v350_v44 = vadd.f32 %v342_v35, %v328_v20  ;;  %v351_v45 = vadd.f32 %v343_v36, %v329_v24  ;;  %v375_v51 = vstv %s1882_s5  ;;  %v413_v55 = vstv %s1886_s6  ;;  %s2160_s5 = sld [smem:[#allocation2 + $0x1e]] }
  0x58   :  { %v370_v49 = vadd.f32 %v362_v42, %v348_v40  ;;  %v371_v50 = vadd.f32 %v363_v43, %v349_v41  ;;  %v376_v53 = vmul.f32 %v375_v51, %v1743_v2  ;;  %v377_v54 = vmul.f32 %v375_v51, %v1775_v32  ;;  %s2164_s6 = sld [smem:[#allocation5 + $0x2]] }
  0x59   :  { %v372_v52 = vadd.f32 %v364_v46, %v350_v44  ;;  %v378_v56 = vmul.f32 %v375_v51, %v1748_v3  ;;  %v379_v57 = vmul.f32 %v375_v51, %v1780_v37  ;;  %v380_v58 = vmul.f32 %v375_v51, %v1813_v29 }
  0x5a   :  { %v381_v59 = vmul.f32 %v375_v51, %v1842_v7  ;;  %v382_v60 = vmul.f32 %v375_v51, %v1873_v61  ;;  %v383_v62 = vmul.f32 %v375_v51, %v1900_v47  ;;  %v392_v63 = vrot.slane %v376_v53, 3 }
  0x5b   :  { %v393_v4 = vrot.slane %v377_v54, 3  ;;  %v395_v5 = vrot.slane %v378_v56, 3  ;;  %v396_v6 = vrot.slane %v379_v57, 3  ;;  %v398_v8 = vrot.slane %v380_v58, 3 }
  0x5c   :  { %v399_v9 = vrot.slane %v381_v59, 3  ;;  %v401_v11 = vrot.slane %v382_v60, 3  ;;  %v402_v12 = vrot.slane %v383_v62, 3  ;;  %v414_v13 = vmul.f32 %v413_v55, %v1743_v2 }
  0x5d   :  { %v394_v10 = vsel %vm130_vm0, %v392_v63, %v393_v4  ;;  %v373_v14 = vadd.f32 %v365_v48, %v351_v45  ;;  %v397_v15 = vsel %vm130_vm0, %v395_v5, %v396_v6  ;;  %v415_v17 = vmul.f32 %v413_v55, %v1775_v32 }
  0x5e   :  { %v400_v16 = vsel %vm130_vm0, %v398_v8, %v399_v9  ;;  %v403_v18 = vsel %vm130_vm0, %v401_v11, %v402_v12  ;;  %v408_v19 = vadd.f32 %v394_v10, %v370_v49  ;;  %v409_v20 = vadd.f32 %v397_v15, %v371_v50 }
  0x5f   :  { %v416_v22 = vmul.f32 %v413_v55, %v1748_v3  ;;  %v410_v23 = vadd.f32 %v400_v16, %v372_v52  ;;  %v417_v24 = vmul.f32 %v413_v55, %v1780_v37  ;;  %v418_v25 = vmul.f32 %v413_v55, %v1813_v29 }
  0x60   :  { %v419_v28 = vmul.f32 %v413_v55, %v1842_v7  ;;  %v420_v30 = vmul.f32 %v413_v55, %v1873_v61  ;;  %v421_v21 = vmul.f32 %v413_v55, %v1900_v47  ;;  %v430_v31 = vrot.slane %v414_v13, 4 }
  0x61   :  { %v431_v33 = vrot.slane %v415_v17, 4  ;;  %v433_v34 = vrot.slane %v416_v22, 4  ;;  %v434_v35 = vrot.slane %v417_v24, 4  ;;  %v436_v36 = vrot.slane %v418_v25, 4 }
  0x62   :  { %v437_v38 = vrot.slane %v419_v28, 4  ;;  %v411_v39 = vadd.f32 %v403_v18, %v373_v14  ;;  %v439_v41 = vrot.slane %v420_v30, 4  ;;  %v440_v42 = vrot.slane %v421_v21, 4 }
  0x63   :  { %v432_v40 = vsel %vm169_vm1, %v430_v31, %v431_v33  ;;  %v435_v43 = vsel %vm169_vm1, %v433_v34, %v434_v35  ;;  %v514_v46 = vstv %s1912_s9  ;;  %v511_v50 = vstv %s1916_s10 }
  0x64   :  { %v438_v44 = vsel %vm169_vm1, %v436_v36, %v437_v38  ;;  %v446_v45 = vadd.f32 %v432_v40, %v408_v19  ;;  %v441_v48 = vsel %vm169_vm1, %v439_v41, %v440_v42  ;;  %v515_v51 = vmul.f32 %v514_v46, %v1733_v0 }
  0x65   :  { %v448_v49 = vadd.f32 %v438_v44, %v410_v23  ;;  %v1935_v52 = vadd.f32 %v435_v43, %v409_v20  ;;  %v1937_v54 = vadd.f32 %v441_v48, %v411_v39  ;;  %v516_v56 = vmul.f32 %v514_v46, %v1738_v1 }
  0x66   :  { %v451_v53 = vrot.slane %v446_v45, 7  ;;  %v517_v57 = vmul.f32 %v514_v46, %v1743_v2  ;;  %v518_v58 = vmul.f32 %v514_v46, %v1748_v3  ;;  %v519_v59 = vadd.f32 %v515_v51, %v511_v50 }
  0x67   :  { %v481_v55 = vrot.slane %v448_v49, 7  ;;  %v524_v60 = vstv %s1561_s11  ;;  %v1689_v62 = vmov 0   ;;  %v1690_v5 = vmov 2  }
  0x68   :  { %vm453_vm2 = vcmp.gt.f32.partialorder %v446_v45, %v451_v53  ;;  %v1691_v8 = vmov 4   ;;  %v520_v15 = vadd.f32 %v516_v56, %v511_v50  ;;  %v521_v16 = vadd.f32 %v517_v57, %v511_v50 }
  0x69   :  { %v454_v63 = vsel %vm453_vm2, 1, %v1689_v62  ;;  %v455_v4 = vsel %vm453_vm2, %v446_v45, %v451_v53  ;;  %v470_v6 = vsel %vm453_vm2, 3, %v1690_v5  ;;  %v475_v9 = vsel %vm453_vm2, 5, %v1691_v8 }
  0x6a   :  { %v457_v10 = vrot.slane %v455_v4, 1  ;;  %v460_v11 = vrot.slane %v454_v63, 1  ;;  %v471_v12 = vrot.slane %v470_v6, 1  ;;  %v476_v13 = vrot.slane %v475_v9, 1 }
  0x6b   :  { %vm1945_vm3 = vcmp.gt.f32.partialorder %v448_v49, %v481_v55  ;;  %v525_v17 = vmul.f32 %v524_v60, %v1733_v0  ;;  %v1692_v18 = vmov 12   ;;  %v2585_v22 = vmov 14  }
  0x6c   :  { %vm459_vm4 = vcmp.gt.f32.partialorder %v1935_v52, %v457_v10  ;;  %v484_v19 = vsel %vm1945_vm3, 13, %v1692_v18  ;;  %v485_v20 = vsel %vm1945_vm3, %v448_v49, %v481_v55  ;;  %v500_v23 = vsel %vm1945_vm3, 15, %v2585_v22 }
  0x6d   :  { %v461_v24 = vsel %vm459_vm4, 6, %v460_v11  ;;  %v462_v25 = vsel %vm459_vm4, %v1935_v52, %v457_v10  ;;  %v472_v28 = vsel %vm459_vm4, 8, %v471_v12  ;;  %v526_v30 = vmul.f32 %v524_v60, %v1738_v1 }
  0x6e   :  { %v464_v21 = vrot.slane %v462_v25, 7  ;;  %v467_v31 = vrot.slane %v461_v24, 7  ;;  %v477_v33 = vsel %vm459_vm4, 10, %v476_v13  ;;  %v527_v34 = vmul.f32 %v524_v60, %v1743_v2 }
  0x6f   :  { %v487_v35 = vrot.slane %v485_v20, 1  ;;  %v490_v36 = vrot.slane %v484_v19, 1  ;;  %v501_v38 = vrot.slane %v500_v23, 1  ;;  %v2584_v39 = vmov 16  }
  0x70   :  { %v505_v40 = vsel %vm1945_vm3, 17, %v2584_v39  ;;  %vm1972_vm5 = vcmp.gt.f32.partialorder %v1935_v52, %v464_v21  ;;  %v473_v42 = vrot.slane %v472_v28, 7  ;;  %v528_v44 = vmul.f32 %v524_v60, %v1748_v3 }
  0x71   :  { %v506_v43 = vrot.slane %v505_v40, 1  ;;  %v1979_v45 = vsel %vm1972_vm5, 7, %v467_v31  ;;  %v478_v46 = vrot.slane %v477_v33, 7  ;;  %v522_v48 = vadd.f32 %v518_v58, %v511_v50 }
  0x72   :  { %v533_v49 = vrot.slane %v525_v17, 1  ;;  %vm489_vm6 = vcmp.gt.f32.partialorder %v1937_v54, %v487_v35  ;;  %v534_v51 = vrot.slane %v526_v30, 1  ;;  %v535_v53 = vrot.slane %v527_v34, 1 }
  0x73   :  { %v536_v55 = vrot.slane %v528_v44, 1  ;;  %v491_v56 = vsel %vm489_vm6, 18, %v490_v36  ;;  %v1983_v57 = vsel %vm489_vm6, %v1937_v54, %v487_v35  ;;  %v1985_v63 = vsel %vm489_vm6, 20, %v501_v38 }
  0x74   :  { %v1987_v60 = vsel %vm489_vm6, 22, %v506_v43  ;;  %v1992_v50 = vsel %vm1972_vm5, %v1935_v52, %v464_v21  ;;  %v1996_v58 = vsel %vm1972_vm5, 9, %v473_v42  ;;  %v494_v4 = vrot.slane %v1983_v57, 7 }
  0x75   :  { %v497_v6 = vrot.slane %v491_v56, 7  ;;  %v2001_v9 = vsel %vm1972_vm5, 11, %v478_v46  ;;  %v503_v10 = vrot.slane %v1985_v63, 7  ;;  %v508_v11 = vrot.slane %v1987_v60, 7 }
  0x76   :  { %v541_v12 = vadd.f32 %v533_v49, %v519_v59  ;;  %vm2008_vm7 = vcmp.gt.f32.partialorder %v1937_v54, %v494_v4  ;;  %v542_v13 = vadd.f32 %v534_v51, %v520_v15  ;;  %v546_v14 = vstv %s1961_s12  ;;  %s2230_s12 = sld [smem:[#allocation2 + $0x20]] }
  0x77   :  { %v568_v17 = vstv %s1964_s13  ;;  %v2016_v19 = vsel %vm2008_vm7, 19, %v497_v6  ;;  %v543_v20 = vadd.f32 %v535_v53, %v521_v16  ;;  %v544_v23 = vadd.f32 %v536_v55, %v522_v48  ;;  %s2233_s13 = sld [smem:[#allocation2 + $0x21]] }
  0x78   :  { %v606_v24 = vstv %s1969_s14  ;;  %v547_v25 = vmul.f32 %v546_v14, %v1733_v0  ;;  %v548_v59 = vmul.f32 %v546_v14, %v1738_v1  ;;  %v549_v28 = vmul.f32 %v546_v14, %v1743_v2  ;;  %s2238_s14 = sld [smem:[#allocation2 + $0x22]] }
  0x79   :  { %v550_v30 = vmul.f32 %v546_v14, %v1748_v3  ;;  %v569_v21 = vmul.f32 %v568_v17, %v1733_v0  ;;  %v570_v15 = vmul.f32 %v568_v17, %v1761_v26  ;;  %v571_v31 = vmul.f32 %v568_v17, %v1738_v1 }
  0x7a   :  { %v572_v33 = vmul.f32 %v568_v17, %v1766_v27  ;;  %v555_v34 = vrot.slane %v547_v25, 2  ;;  %v556_v16 = vrot.slane %v548_v59, 2  ;;  %v557_v35 = vrot.slane %v549_v28, 2 }
  0x7b   :  { %v558_v36 = vrot.slane %v550_v30, 2  ;;  %v573_v38 = vmul.f32 %v568_v17, %v1743_v2  ;;  %v574_v40 = vmul.f32 %v568_v17, %v1775_v32  ;;  %v575_v41 = vmul.f32 %v568_v17, %v1748_v3 }
  0x7c   :  { %v576_v42 = vmul.f32 %v568_v17, %v1780_v37  ;;  %v563_v43 = vadd.f32 %v555_v34, %v541_v12  ;;  %v564_v44 = vadd.f32 %v556_v16, %v542_v13  ;;  %v565_v46 = vadd.f32 %v557_v35, %v543_v20 }
  0x7d   :  { %v566_v48 = vadd.f32 %v558_v36, %v544_v23  ;;  %v585_v49 = vrot.slane %v569_v21, 3  ;;  %v586_v51 = vrot.slane %v570_v15, 3  ;;  %v588_v53 = vrot.slane %v571_v31, 3 }
  0x7e   :  { %v589_v55 = vrot.slane %v572_v33, 3  ;;  %v591_v56 = vrot.slane %v573_v38, 3  ;;  %v592_v6 = vrot.slane %v574_v40, 3  ;;  %v594_v14 = vrot.slane %v575_v41, 3 }
  0x7f   :  { %v595_v25 = vrot.slane %v576_v42, 3  ;;  %v587_v59 = vsel %vm130_vm0, %v585_v49, %v586_v51  ;;  %v607_v12 = vmul.f32 %v606_v24, %v1733_v0  ;;  %v608_v13 = vmul.f32 %v606_v24, %v1761_v26 }
  0x80   :  { %v590_v17 = vsel %vm130_vm0, %v588_v53, %v589_v55  ;;  %v593_v20 = vsel %vm130_vm0, %v591_v56, %v592_v6  ;;  %v601_v28 = vadd.f32 %v587_v59, %v563_v43  ;;  %v609_v31 = vmul.f32 %v606_v24, %v1738_v1 }
  0x81   :  { %v596_v23 = vsel %vm130_vm0, %v594_v14, %v595_v25  ;;  %v602_v30 = vadd.f32 %v590_v17, %v564_v44  ;;  %v603_v21 = vadd.f32 %v593_v20, %v565_v46  ;;  %v610_v33 = vmul.f32 %v606_v24, %v1766_v27 }
  0x82   :  { %v604_v15 = vadd.f32 %v596_v23, %v566_v48  ;;  %v611_v34 = vmul.f32 %v606_v24, %v1743_v2  ;;  %v612_v16 = vmul.f32 %v606_v24, %v1775_v32  ;;  %v613_v0 = vmul.f32 %v606_v24, %v1748_v3 }
  0x83   :  { %v614_v26 = vmul.f32 %v606_v24, %v1780_v37  ;;  %v623_v35 = vrot.slane %v607_v12, 4  ;;  %v624_v36 = vrot.slane %v608_v13, 4  ;;  %v626_v38 = vrot.slane %v609_v31, 4 }
  0x84   :  { %v627_v40 = vrot.slane %v610_v33, 4  ;;  %v629_v41 = vrot.slane %v611_v34, 4  ;;  %v630_v42 = vrot.slane %v612_v16, 4  ;;  %v632_v43 = vrot.slane %v613_v0, 4 }
  0x85   :  { %v633_v44 = vrot.slane %v614_v26, 4  ;;  %v625_v46 = vsel %vm169_vm1, %v623_v35, %v624_v36  ;;  %v644_v49 = vstv %s2031_s15  ;;  %v654_v51 = vstv %s2033_s16 }
  0x86   :  { %v628_v48 = vsel %vm169_vm1, %v626_v38, %v627_v40  ;;  %v631_v24 = vsel %vm169_vm1, %v629_v41, %v630_v42  ;;  %v639_v55 = vadd.f32 %v625_v46, %v601_v28  ;;  %v645_v25 = vmul.f32 %v644_v49, %v1738_v1 }
  0x87   :  { %v634_v53 = vsel %vm169_vm1, %v632_v43, %v633_v44  ;;  %v640_v56 = vadd.f32 %v628_v48, %v602_v30  ;;  %v641_v6 = vadd.f32 %v631_v24, %v603_v21  ;;  %v646_v59 = vmul.f32 %v644_v49, %v1743_v2 }
  0x88   :  { %v642_v14 = vadd.f32 %v634_v53, %v604_v15  ;;  %v647_v17 = vmul.f32 %v644_v49, %v1748_v3  ;;  %v648_v12 = vmul.f32 %v644_v49, %v1813_v29  ;;  %v655_v13 = vmul.f32 %v654_v51, %v1738_v1 }
  0x89   :  { %v656_v20 = vmul.f32 %v654_v51, %v1743_v2  ;;  %v649_v23 = vadd.f32 %v645_v25, %v639_v55  ;;  %v650_v31 = vadd.f32 %v646_v59, %v640_v56  ;;  %v657_v28 = vmul.f32 %v654_v51, %v1748_v3 }
  0x8a   :  { %v658_v30 = vmul.f32 %v654_v51, %v1813_v29  ;;  %v651_v21 = vadd.f32 %v647_v17, %v641_v6  ;;  %v652_v15 = vadd.f32 %v648_v12, %v642_v14  ;;  %v663_v33 = vrot.slane %v655_v13, 1 }
  0x8b   :  { %v664_v34 = vrot.slane %v656_v20, 1  ;;  %v665_v16 = vrot.slane %v657_v28, 1  ;;  %v676_v26 = vstv %s2047_s17  ;;  %v698_v35 = vstv %s2049_s18 }
  0x8c   :  { %v666_v0 = vrot.slane %v658_v30, 1  ;;  %v671_v36 = vadd.f32 %v663_v33, %v649_v23  ;;  %v677_v40 = vmul.f32 %v676_v26, %v1738_v1  ;;  %v678_v41 = vmul.f32 %v676_v26, %v1743_v2 }
  0x8d   :  { %v672_v38 = vadd.f32 %v664_v34, %v650_v31  ;;  %v673_v42 = vadd.f32 %v665_v16, %v651_v21  ;;  %v679_v44 = vmul.f32 %v676_v26, %v1748_v3  ;;  %v680_v46 = vmul.f32 %v676_v26, %v1813_v29 }
  0x8e   :  { %v674_v43 = vadd.f32 %v666_v0, %v652_v15  ;;  %v685_v48 = vrot.slane %v677_v40, 2  ;;  %v686_v49 = vrot.slane %v678_v41, 2  ;;  %v699_v51 = vmul.f32 %v698_v35, %v1738_v1 }
  0x8f   :  { %v700_v24 = vmul.f32 %v698_v35, %v1766_v27  ;;  %v687_v53 = vrot.slane %v679_v44, 2  ;;  %v688_v55 = vrot.slane %v680_v46, 2  ;;  %v701_v56 = vmul.f32 %v698_v35, %v1743_v2 }
  0x90   :  { %v702_v6 = vmul.f32 %v698_v35, %v1775_v32  ;;  %v693_v14 = vadd.f32 %v685_v48, %v671_v36  ;;  %v694_v25 = vadd.f32 %v686_v49, %v672_v38  ;;  %v703_v59 = vmul.f32 %v698_v35, %v1748_v3 }
  0x91   :  { %v704_v17 = vmul.f32 %v698_v35, %v1780_v37  ;;  %v695_v12 = vadd.f32 %v687_v53, %v673_v42  ;;  %v696_v13 = vadd.f32 %v688_v55, %v674_v43  ;;  %v705_v20 = vmul.f32 %v698_v35, %v1813_v29 }
  0x92   :  { %v706_v23 = vmul.f32 %v698_v35, %v1842_v7  ;;  %v715_v31 = vrot.slane %v699_v51, 3  ;;  %v716_v28 = vrot.slane %v700_v24, 3  ;;  %v718_v30 = vrot.slane %v701_v56, 3 }
  0x93   :  { %v719_v21 = vrot.slane %v702_v6, 3  ;;  %v721_v15 = vrot.slane %v703_v59, 3  ;;  %v722_v33 = vrot.slane %v704_v17, 3  ;;  %v724_v34 = vrot.slane %v705_v20, 3 }
  0x94   :  { %v725_v16 = vrot.slane %v706_v23, 3  ;;  %v717_v0 = vsel %vm130_vm0, %v715_v31, %v716_v28  ;;  %v736_v36 = vstv %s2067_s19  ;;  %v774_v38 = vstv %s2071_s20  ;;  %v2108_v23 = vld [vmem:[%s2579_s0 + $0x30] sm:$0xff]  ;;  %s2305_s19 = sld [smem:[#allocation2 + $0x23]] }
  0x95   :  { %v720_v26 = vsel %vm130_vm0, %v718_v30, %v719_v21  ;;  %v723_v40 = vsel %vm130_vm0, %v721_v15, %v722_v33  ;;  %v731_v42 = vadd.f32 %v717_v0, %v693_v14  ;;  %v737_v46 = vmul.f32 %v736_v36, %v1738_v1  ;;  %s2307_s20 = sld [smem:[#allocation2 + $0x24]] }
  0x96   :  { %v726_v41 = vsel %vm130_vm0, %v724_v34, %v725_v16  ;;  %v732_v35 = vadd.f32 %v720_v26, %v694_v25  ;;  %v733_v43 = vadd.f32 %v723_v40, %v695_v12  ;;  %v738_v48 = vmul.f32 %v736_v36, %v1766_v27 }
  0x97   :  { %v734_v44 = vadd.f32 %v726_v41, %v696_v13  ;;  %v739_v49 = vmul.f32 %v736_v36, %v1743_v2  ;;  %v740_v51 = vmul.f32 %v736_v36, %v1775_v32  ;;  %v741_v24 = vmul.f32 %v736_v36, %v1748_v3 }
  0x98   :  { %v742_v53 = vmul.f32 %v736_v36, %v1780_v37  ;;  %v743_v55 = vmul.f32 %v736_v36, %v1813_v29  ;;  %v744_v56 = vmul.f32 %v736_v36, %v1842_v7  ;;  %v753_v6 = vrot.slane %v737_v46, 4  ;;  %v2122_v36 = vld [vmem:[%s2579_s0 + $0x20] sm:$0xff] }
  0x99   :  { %v754_v14 = vrot.slane %v738_v48, 4  ;;  %v756_v25 = vrot.slane %v739_v49, 4  ;;  %v757_v1 = vrot.slane %v740_v51, 4  ;;  %v759_v59 = vrot.slane %v741_v24, 4 }
  0x9a   :  { %v760_v27 = vrot.slane %v742_v53, 4  ;;  %v762_v12 = vrot.slane %v743_v55, 4  ;;  %v763_v32 = vrot.slane %v744_v56, 4  ;;  %v775_v3 = vmul.f32 %v774_v38, %v1743_v2 }
  0x9b   :  { %v755_v17 = vsel %vm169_vm1, %v753_v6, %v754_v14  ;;  %v758_v37 = vsel %vm169_vm1, %v756_v25, %v757_v1  ;;  %v776_v31 = vmul.f32 %v2108_v23, %v774_v38  ;;  %v777_v15 = vmul.f32 %v774_v38, %v1813_v29 }
  0x9c   :  { %v761_v13 = vsel %vm169_vm1, %v759_v59, %v760_v27  ;;  %v769_v20 = vadd.f32 %v755_v17, %v731_v42  ;;  %v764_v28 = vsel %vm169_vm1, %v762_v12, %v763_v32  ;;  %v770_v30 = vadd.f32 %v758_v37, %v732_v35 }
  0x9d   :  { %v771_v21 = vadd.f32 %v761_v13, %v733_v43  ;;  %v772_v2 = vadd.f32 %v764_v28, %v734_v44  ;;  %v778_v33 = vmul.f32 %v774_v38, %v1873_v61  ;;  %v784_v16 = vstv %s2089_s21  ;;  %s2320_s21 = sld [smem:[#allocation2 + $0x25]] }
  0x9e   :  { %v779_v34 = vadd.f32 %v775_v3, %v769_v20  ;;  %v780_v0 = vadd.f32 %v776_v31, %v770_v30  ;;  %v785_v40 = vmul.f32 %v2122_v36, %v784_v16  ;;  %v786_v41 = vmul.f32 %v2108_v23, %v784_v16  ;;  %v2145_v31 = vld [vmem:[%s2579_s0 + $0x28] sm:$0x3] }
  0x9f   :  { %v781_v26 = vadd.f32 %v777_v15, %v771_v21  ;;  %v782_v42 = vadd.f32 %v778_v33, %v772_v2  ;;  %v787_v35 = vmul.f32 %v784_v16, %v1813_v29  ;;  %v788_v38 = vmul.f32 %v784_v16, %v1873_v61 }
  0xa0   :  { %v806_v43 = vstv %s2097_s22  ;;  %v793_v44 = vrot.slane %v785_v40, 1  ;;  %v794_v46 = vrot.slane %v786_v41, 1  ;;  %v2138_v1 = vsel %vm2008_vm7, %v1937_v54, %v494_v4  ;;  %v2153_v4 = vld [vmem:[%s2579_s0 + $0x38] sm:$0x3]  ;;  %s2322_s22 = sld [smem:[#allocation2 + $0x26]] }
  0xa1   :  { %v807_v48 = vmul.f32 %v2122_v36, %v806_v43  ;;  %v808_v49 = vmul.f32 %v2108_v23, %v806_v43  ;;  %v795_v51 = vrot.slane %v787_v35, 1  ;;  %v796_v24 = vrot.slane %v788_v38, 1 }
  0xa2   :  { %v809_v53 = vmul.f32 %v806_v43, %v1813_v29  ;;  %v810_v55 = vmul.f32 %v806_v43, %v1873_v61  ;;  %v801_v56 = vadd.f32 %v793_v44, %v779_v34  ;;  %v802_v6 = vadd.f32 %v794_v46, %v780_v0 }
  0xa3   :  { %v815_v14 = vrot.slane %v807_v48, 2  ;;  %v816_v25 = vrot.slane %v808_v49, 2  ;;  %v803_v59 = vadd.f32 %v795_v51, %v781_v26  ;;  %v804_v27 = vadd.f32 %v796_v24, %v782_v42 }
  0xa4   :  { %v817_v17 = vrot.slane %v809_v53, 2  ;;  %v818_v12 = vrot.slane %v810_v55, 2  ;;  %v828_v37 = vstv %s2113_s2  ;;  %v866_v28 = vstv %s2117_s24  ;;  %s2345_s2 = sld [smem:[#allocation2 + $0x27]] }
  0xa5   :  { %v823_v32 = vadd.f32 %v815_v14, %v801_v56  ;;  %v824_v3 = vadd.f32 %v816_v25, %v802_v6  ;;  %v829_v20 = vmul.f32 %v2122_v36, %v828_v37  ;;  %v830_v57 = vmul.f32 %v2145_v31, %v828_v37  ;;  %s2349_s24 = sld [smem:[#allocation2 + $0x28]] }
  0xa6   :  { %v825_v13 = vadd.f32 %v817_v17, %v803_v59  ;;  %v831_v54 = vmul.f32 %v2108_v23, %v828_v37  ;;  %v832_v30 = vmul.f32 %v2153_v4, %v828_v37  ;;  %v833_v21 = vmul.f32 %v828_v37, %v1813_v29 }
  0xa7   :  { %v834_v15 = vmul.f32 %v828_v37, %v1842_v7  ;;  %v835_v2 = vmul.f32 %v828_v37, %v1873_v61  ;;  %v836_v33 = vmul.f32 %v828_v37, %v1900_v47  ;;  %v845_v34 = vrot.slane %v829_v20, 3 }
  0xa8   :  { %v846_v16 = vrot.slane %v830_v57, 3  ;;  %v848_v0 = vrot.slane %v831_v54, 3  ;;  %v849_v26 = vrot.slane %v832_v30, 3  ;;  %v851_v40 = vrot.slane %v833_v21, 3 }
  0xa9   :  { %v852_v41 = vrot.slane %v834_v15, 3  ;;  %v854_v35 = vrot.slane %v835_v2, 3  ;;  %v855_v38 = vrot.slane %v836_v33, 3  ;;  %v867_v43 = vmul.f32 %v2122_v36, %v866_v28  ;;  %v2187_v2 = vld [vmem:[%s2579_s0] sm:$0xff] }
  0xaa   :  { %v847_v42 = vsel %vm130_vm0, %v845_v34, %v846_v16  ;;  %v826_v44 = vadd.f32 %v818_v12, %v804_v27  ;;  %v850_v46 = vsel %vm130_vm0, %v848_v0, %v849_v26  ;;  %v868_v49 = vmul.f32 %v2145_v31, %v866_v28 }
  0xab   :  { %v853_v48 = vsel %vm130_vm0, %v851_v40, %v852_v41  ;;  %v856_v51 = vsel %vm130_vm0, %v854_v35, %v855_v38  ;;  %v861_v24 = vadd.f32 %v847_v42, %v823_v32  ;;  %v862_v53 = vadd.f32 %v850_v46, %v824_v3  ;;  %v2207_v42 = vld [vmem:[%s2579_s0 + $0x10] sm:$0xff] }
  0xac   :  { %v869_v55 = vmul.f32 %v2108_v23, %v866_v28  ;;  %v863_v56 = vadd.f32 %v853_v48, %v825_v13  ;;  %v870_v6 = vmul.f32 %v2153_v4, %v866_v28  ;;  %v871_v14 = vmul.f32 %v866_v28, %v1813_v29 }
  0xad   :  { %v872_v25 = vmul.f32 %v866_v28, %v1842_v7  ;;  %v873_v59 = vmul.f32 %v866_v28, %v1873_v61  ;;  %v874_v27 = vmul.f32 %v866_v28, %v1900_v47  ;;  %v883_v17 = vrot.slane %v867_v43, 4 }
  0xae   :  { %v884_v12 = vrot.slane %v868_v49, 4  ;;  %v886_v32 = vrot.slane %v869_v55, 4  ;;  %v887_v3 = vrot.slane %v870_v6, 4  ;;  %v889_v37 = vrot.slane %v871_v14, 4 }
  0xaf   :  { %v890_v13 = vrot.slane %v872_v25, 4  ;;  %v864_v20 = vadd.f32 %v856_v51, %v826_v44  ;;  %v892_v29 = vrot.slane %v873_v59, 4  ;;  %v893_v54 = vrot.slane %v874_v27, 4 }
  0xb0   :  { %v885_v57 = vsel %vm169_vm1, %v883_v17, %v884_v12  ;;  %v888_v7 = vsel %vm169_vm1, %v886_v32, %v887_v3  ;;  %v967_v61 = vstv %s2160_s5  ;;  %v964_v15 = vstv %s2164_s6  ;;  %s2400_s6 = sld [smem:[#allocation2 + $0x2c]] }
  0xb1   :  { %v891_v30 = vsel %vm169_vm1, %v889_v37, %v890_v13  ;;  %v899_v21 = vadd.f32 %v885_v57, %v861_v24  ;;  %v894_v47 = vsel %vm169_vm1, %v892_v29, %v893_v54  ;;  %v968_v33 = vmul.f32 %v2187_v2, %v967_v61 }
  0xb2   :  { %v901_v28 = vadd.f32 %v891_v30, %v863_v56  ;;  %v2194_v34 = vsel %vm2008_vm7, 21, %v503_v10  ;;  %v2200_v16 = vsel %vm2008_vm7, 23, %v508_v11  ;;  %v900_v0 = vadd.f32 %v888_v7, %v862_v53 }
  0xb3   :  { %v904_v26 = vrot.slane %v899_v21, 7  ;;  %v2202_v40 = vadd.f32 %v894_v47, %v864_v20  ;;  %v969_v63 = vmul.f32 %v2207_v42, %v967_v61  ;;  %v970_v10 = vmul.f32 %v2122_v36, %v967_v61 }
  0xb4   :  { %v934_v41 = vrot.slane %v901_v28, 7  ;;  %v971_v60 = vmul.f32 %v2108_v23, %v967_v61  ;;  %v972_v52 = vadd.f32 %v968_v33, %v964_v15  ;;  %v977_v11 = vstv %s2174_s7 }
  0xb5   :  { %vm906_vm8 = vcmp.gt.f32.partialorder %v899_v21, %v904_v26  ;;  %v973_v53 = vadd.f32 %v969_v63, %v964_v15  ;;  %v974_v55 = vadd.f32 %v970_v10, %v964_v15  ;;  %v978_v56 = vmul.f32 %v2187_v2, %v977_v11 }
  0xb6   :  { %v907_v35 = vsel %vm906_vm8, 1, %v1689_v62  ;;  %v908_v38 = vsel %vm906_vm8, %v899_v21, %v904_v26  ;;  %v923_v43 = vsel %vm906_vm8, 3, %v1690_v5  ;;  %v928_v44 = vsel %vm906_vm8, 5, %v1691_v8 }
  0xb7   :  { %v910_v46 = vrot.slane %v908_v38, 1  ;;  %v913_v48 = vrot.slane %v907_v35, 1  ;;  %v924_v49 = vrot.slane %v923_v43, 1  ;;  %v929_v51 = vrot.slane %v928_v44, 1 }
  0xb8   :  { %vm2216_vm9 = vcmp.gt.f32.partialorder %v901_v28, %v934_v41  ;;  %v979_v12 = vmul.f32 %v2207_v42, %v977_v11  ;;  %v980_v13 = vmul.f32 %v2122_v36, %v977_v11  ;;  %v981_v61 = vmul.f32 %v2108_v23, %v977_v11 }
  0xb9   :  { %vm912_vm10 = vcmp.gt.f32.partialorder %v900_v0, %v910_v46  ;;  %v937_v6 = vsel %vm2216_vm9, 13, %v1692_v18  ;;  %v938_v14 = vsel %vm2216_vm9, %v901_v28, %v934_v41  ;;  %v953_v25 = vsel %vm2216_vm9, 15, %v2585_v22 }
  0xba   :  { %v914_v59 = vsel %vm912_vm10, 6, %v913_v48  ;;  %v915_v27 = vsel %vm912_vm10, %v900_v0, %v910_v46  ;;  %v925_v17 = vsel %vm912_vm10, 8, %v924_v49  ;;  %v930_v37 = vsel %vm912_vm10, 10, %v929_v51 }
  0xbb   :  { %v917_v32 = vrot.slane %v915_v27, 7  ;;  %v920_v3 = vrot.slane %v914_v59, 7  ;;  %v940_v20 = vrot.slane %v938_v14, 1  ;;  %v943_v57 = vrot.slane %v937_v6, 1 }
  0xbc   :  { %v954_v29 = vrot.slane %v953_v25, 1  ;;  %v958_v54 = vsel %vm2216_vm9, 17, %v2584_v39  ;;  %v926_v30 = vrot.slane %v925_v17, 7  ;;  %v931_v28 = vrot.slane %v930_v37, 7 }
  0xbd   :  { %vm2240_vm11 = vcmp.gt.f32.partialorder %v900_v0, %v917_v32  ;;  %v959_v21 = vrot.slane %v958_v54, 1  ;;  %v975_v33 = vadd.f32 %v971_v60, %v964_v15  ;;  %v986_v26 = vrot.slane %v978_v56, 1 }
  0xbe   :  { %v2247_v47 = vsel %vm2240_vm11, 7, %v920_v3  ;;  %vm942_vm12 = vcmp.gt.f32.partialorder %v2202_v40, %v940_v20  ;;  %v987_v41 = vrot.slane %v979_v12, 1  ;;  %v988_v63 = vrot.slane %v980_v13, 1 }
  0xbf   :  { %v989_v10 = vrot.slane %v981_v61, 1  ;;  %v944_v35 = vsel %vm942_vm12, 18, %v943_v57  ;;  %v2251_v38 = vsel %vm942_vm12, %v2202_v40, %v940_v20  ;;  %v2253_v43 = vsel %vm942_vm12, 20, %v954_v29 }
  0xc0   :  { %v2255_v11 = vsel %vm942_vm12, 22, %v959_v21  ;;  %v2259_v15 = vsel %vm2240_vm11, %v900_v0, %v917_v32  ;;  %v2263_v60 = vsel %vm2240_vm11, 9, %v926_v30  ;;  %v947_v44 = vrot.slane %v2251_v38, 7 }
  0xc1   :  { %v950_v46 = vrot.slane %v944_v35, 7  ;;  %v2268_v48 = vsel %vm2240_vm11, 11, %v931_v28  ;;  %v956_v49 = vrot.slane %v2253_v43, 7  ;;  %v961_v51 = vrot.slane %v2255_v11, 7 }
  0xc2   :  { %v994_v24 = vadd.f32 %v986_v26, %v972_v52  ;;  %vm2275_vm13 = vcmp.gt.f32.partialorder %v2202_v40, %v947_v44  ;;  %v995_v56 = vadd.f32 %v987_v41, %v973_v53  ;;  %v999_v6 = vstv %s2230_s12  ;;  %v1609_v53 = vld [vmem:[%s2579_s0 + $0x8] sm:$0x3] }
  0xc3   :  { %v1021_v14 = vstv %s2233_s13  ;;  %v2283_v25 = vsel %vm2275_vm13, 19, %v950_v46  ;;  %v996_v59 = vadd.f32 %v988_v63, %v974_v55  ;;  %v997_v27 = vadd.f32 %v989_v10, %v975_v33  ;;  %v2298_v55 = vld [vmem:[%s2579_s0 + $0x18] sm:$0x3] }
  0xc4   :  { %v1059_v17 = vstv %s2238_s14  ;;  %v1000_v12 = vmul.f32 %v2187_v2, %v999_v6  ;;  %v1001_v52 = vmul.f32 %v2207_v42, %v999_v6  ;;  %v1002_v32 = vmul.f32 %v2122_v36, %v999_v6 }
  0xc5   :  { %v1003_v3 = vmul.f32 %v2108_v23, %v999_v6  ;;  %v1022_v37 = vmul.f32 %v2187_v2, %v1021_v14  ;;  %v1023_v13 = vmul.f32 %v1609_v53, %v1021_v14  ;;  %v1024_v20 = vmul.f32 %v2207_v42, %v1021_v14 }
  0xc6   :  { %v1025_v57 = vmul.f32 %v2298_v55, %v1021_v14  ;;  %v1008_v29 = vrot.slane %v1000_v12, 2  ;;  %v1009_v54 = vrot.slane %v1001_v52, 2  ;;  %v1010_v7 = vrot.slane %v1002_v32, 2 }
  0xc7   :  { %v1011_v30 = vrot.slane %v1003_v3, 2  ;;  %v1026_v21 = vmul.f32 %v2122_v36, %v1021_v14  ;;  %v1027_v61 = vmul.f32 %v2145_v31, %v1021_v14  ;;  %v1028_v28 = vmul.f32 %v2108_v23, %v1021_v14 }
  0xc8   :  { %v1029_v33 = vmul.f32 %v2153_v4, %v1021_v14  ;;  %v1016_v26 = vadd.f32 %v1008_v29, %v994_v24  ;;  %v1017_v41 = vadd.f32 %v1009_v54, %v995_v56  ;;  %v1018_v63 = vadd.f32 %v1010_v7, %v996_v59 }
  0xc9   :  { %v1019_v10 = vadd.f32 %v1011_v30, %v997_v27  ;;  %v1038_v35 = vrot.slane %v1022_v37, 3  ;;  %v1039_v46 = vrot.slane %v1023_v13, 3  ;;  %v1041_v6 = vrot.slane %v1024_v20, 3 }
  0xca   :  { %v1042_v12 = vrot.slane %v1025_v57, 3  ;;  %v1044_v52 = vrot.slane %v1026_v21, 3  ;;  %v1045_v32 = vrot.slane %v1027_v61, 3  ;;  %v1047_v3 = vrot.slane %v1028_v28, 3 }
  0xcb   :  { %v1048_v39 = vrot.slane %v1029_v33, 3  ;;  %v1040_v22 = vsel %vm130_vm0, %v1038_v35, %v1039_v46  ;;  %v1060_v24 = vmul.f32 %v2187_v2, %v1059_v17  ;;  %v1061_v56 = vmul.f32 %v1609_v53, %v1059_v17 }
  0xcc   :  { %v1043_v14 = vsel %vm130_vm0, %v1041_v6, %v1042_v12  ;;  %v1046_v59 = vsel %vm130_vm0, %v1044_v52, %v1045_v32  ;;  %v1054_v37 = vadd.f32 %v1040_v22, %v1016_v26  ;;  %v1062_v29 = vmul.f32 %v2207_v42, %v1059_v17 }
  0xcd   :  { %v1049_v27 = vsel %vm130_vm0, %v1047_v3, %v1048_v39  ;;  %v1055_v13 = vadd.f32 %v1043_v14, %v1017_v41  ;;  %v1056_v20 = vadd.f32 %v1046_v59, %v1018_v63  ;;  %v1063_v54 = vmul.f32 %v2298_v55, %v1059_v17  ;;  %v2336_v59 = vld [vmem:[%s2579_s0 + $0x40] sm:$0xff] }
  0xce   :  { %v1057_v57 = vadd.f32 %v1049_v27, %v1019_v10  ;;  %v1064_v7 = vmul.f32 %v2122_v36, %v1059_v17  ;;  %v1065_v30 = vmul.f32 %v2145_v31, %v1059_v17  ;;  %v1066_v2 = vmul.f32 %v2108_v23, %v1059_v17 }
  0xcf   :  { %v1067_v53 = vmul.f32 %v2153_v4, %v1059_v17  ;;  %v1076_v22 = vrot.slane %v1060_v24, 4  ;;  %v1077_v39 = vrot.slane %v1061_v56, 4  ;;  %v1079_v21 = vrot.slane %v1062_v29, 4 }
  0xd0   :  { %v1080_v61 = vrot.slane %v1063_v54, 4  ;;  %v1082_v28 = vrot.slane %v1064_v7, 4  ;;  %v1083_v33 = vrot.slane %v1065_v30, 4  ;;  %v1085_v26 = vrot.slane %v1066_v2, 4 }
  0xd1   :  { %v1086_v41 = vrot.slane %v1067_v53, 4  ;;  %v1078_v63 = vsel %vm169_vm1, %v1076_v22, %v1077_v39  ;;  %v1097_v35 = vstv %s2305_s19  ;;  %v1107_v46 = vstv %s2307_s20 }
  0xd2   :  { %v1081_v10 = vsel %vm169_vm1, %v1079_v21, %v1080_v61  ;;  %v1084_v17 = vsel %vm169_vm1, %v1082_v28, %v1083_v33  ;;  %v1092_v12 = vadd.f32 %v1078_v63, %v1054_v37  ;;  %v1098_v14 = vmul.f32 %v2207_v42, %v1097_v35 }
  0xd3   :  { %v1087_v6 = vsel %vm169_vm1, %v1085_v26, %v1086_v41  ;;  %v1093_v52 = vadd.f32 %v1081_v10, %v1055_v13  ;;  %v1094_v32 = vadd.f32 %v1084_v17, %v1056_v20  ;;  %v1099_v24 = vmul.f32 %v2122_v36, %v1097_v35 }
  0xd4   :  { %v1095_v3 = vadd.f32 %v1087_v6, %v1057_v57  ;;  %v1100_v56 = vmul.f32 %v2108_v23, %v1097_v35  ;;  %v1101_v27 = vmul.f32 %v2336_v59, %v1097_v35  ;;  %v1108_v37 = vmul.f32 %v2207_v42, %v1107_v46 }
  0xd5   :  { %v1109_v13 = vmul.f32 %v2122_v36, %v1107_v46  ;;  %v1102_v20 = vadd.f32 %v1098_v14, %v1092_v12  ;;  %v1103_v57 = vadd.f32 %v1099_v24, %v1093_v52  ;;  %v1110_v29 = vmul.f32 %v2108_v23, %v1107_v46 }
  0xd6   :  { %v1111_v54 = vmul.f32 %v2336_v59, %v1107_v46  ;;  %v1104_v7 = vadd.f32 %v1100_v56, %v1094_v32  ;;  %v1105_v30 = vadd.f32 %v1101_v27, %v1095_v3  ;;  %v1116_v2 = vrot.slane %v1108_v37, 1 }
  0xd7   :  { %v1117_v53 = vrot.slane %v1109_v13, 1  ;;  %v1118_v22 = vrot.slane %v1110_v29, 1  ;;  %v1129_v21 = vstv %s2320_s21  ;;  %v1151_v61 = vstv %s2322_s22 }
  0xd8   :  { %v1119_v39 = vrot.slane %v1111_v54, 1  ;;  %v1124_v28 = vadd.f32 %v1116_v2, %v1102_v20  ;;  %v1130_v26 = vmul.f32 %v2207_v42, %v1129_v21  ;;  %v1131_v41 = vmul.f32 %v2122_v36, %v1129_v21  ;;  %v2363_v54 = vld [vmem:[%s2579_s0 + $0x48] sm:$0x3] }
  0xd9   :  { %v1125_v33 = vadd.f32 %v1117_v53, %v1103_v57  ;;  %v1126_v63 = vadd.f32 %v1118_v22, %v1104_v7  ;;  %v1132_v35 = vmul.f32 %v2108_v23, %v1129_v21  ;;  %v1133_v46 = vmul.f32 %v2336_v59, %v1129_v21 }
  0xda   :  { %v1127_v10 = vadd.f32 %v1119_v39, %v1105_v30  ;;  %v1138_v17 = vrot.slane %v1130_v26, 2  ;;  %v1139_v6 = vrot.slane %v1131_v41, 2  ;;  %v1152_v12 = vmul.f32 %v2207_v42, %v1151_v61 }
  0xdb   :  { %v1153_v52 = vmul.f32 %v2298_v55, %v1151_v61  ;;  %v1140_v32 = vrot.slane %v1132_v35, 2  ;;  %v1141_v3 = vrot.slane %v1133_v46, 2  ;;  %v1154_v14 = vmul.f32 %v2122_v36, %v1151_v61 }
  0xdc   :  { %v1155_v24 = vmul.f32 %v2145_v31, %v1151_v61  ;;  %v1146_v56 = vadd.f32 %v1138_v17, %v1124_v28  ;;  %v1147_v27 = vadd.f32 %v1139_v6, %v1125_v33  ;;  %v1156_v37 = vmul.f32 %v2108_v23, %v1151_v61 }
  0xdd   :  { %v1157_v13 = vmul.f32 %v2153_v4, %v1151_v61  ;;  %v1148_v20 = vadd.f32 %v1140_v32, %v1126_v63  ;;  %v1149_v57 = vadd.f32 %v1141_v3, %v1127_v10  ;;  %v1158_v29 = vmul.f32 %v2336_v59, %v1151_v61 }
  0xde   :  { %v1159_v7 = vmul.f32 %v2363_v54, %v1151_v61  ;;  %v1168_v30 = vrot.slane %v1152_v12, 3  ;;  %v1169_v2 = vrot.slane %v1153_v52, 3  ;;  %v1171_v53 = vrot.slane %v1154_v14, 3 }
  0xdf   :  { %v1172_v22 = vrot.slane %v1155_v24, 3  ;;  %v1174_v39 = vrot.slane %v1156_v37, 3  ;;  %v1175_v21 = vrot.slane %v1157_v13, 3  ;;  %v1177_v28 = vrot.slane %v1158_v29, 3 }
  0xe0   :  { %v1178_v33 = vrot.slane %v1159_v7, 3  ;;  %v1170_v26 = vsel %vm130_vm0, %v1168_v30, %v1169_v2  ;;  %v1189_v63 = vstv %s2345_s2  ;;  %v1227_v10 = vstv %s2349_s24 }
  0xe1   :  { %v1173_v41 = vsel %vm130_vm0, %v1171_v53, %v1172_v22  ;;  %v1176_v35 = vsel %vm130_vm0, %v1174_v39, %v1175_v21  ;;  %v1184_v17 = vadd.f32 %v1170_v26, %v1146_v56  ;;  %v1190_v52 = vmul.f32 %v2207_v42, %v1189_v63 }
  0xe2   :  { %v1179_v46 = vsel %vm130_vm0, %v1177_v28, %v1178_v33  ;;  %v1185_v61 = vadd.f32 %v1173_v41, %v1147_v27  ;;  %v1186_v6 = vadd.f32 %v1176_v35, %v1148_v20  ;;  %v1191_v32 = vmul.f32 %v2298_v55, %v1189_v63 }
  0xe3   :  { %v1187_v12 = vadd.f32 %v1179_v46, %v1149_v57  ;;  %v1192_v3 = vmul.f32 %v2122_v36, %v1189_v63  ;;  %v1193_v14 = vmul.f32 %v2145_v31, %v1189_v63  ;;  %v1194_v24 = vmul.f32 %v2108_v23, %v1189_v63  ;;  %v2396_v46 = vld [vmem:[%s2579_s0 + $0x50] sm:$0xff] }
  0xe4   :  { %v1195_v37 = vmul.f32 %v2153_v4, %v1189_v63  ;;  %v1196_v56 = vmul.f32 %v2336_v59, %v1189_v63  ;;  %v1197_v27 = vmul.f32 %v2363_v54, %v1189_v63  ;;  %v1206_v13 = vrot.slane %v1190_v52, 4 }
  0xe5   :  { %v1207_v20 = vrot.slane %v1191_v32, 4  ;;  %v1209_v57 = vrot.slane %v1192_v3, 4  ;;  %v1210_v42 = vrot.slane %v1193_v14, 4  ;;  %v1212_v29 = vrot.slane %v1194_v24, 4 }
  0xe6   :  { %v1213_v55 = vrot.slane %v1195_v37, 4  ;;  %v1215_v30 = vrot.slane %v1196_v56, 4  ;;  %v1216_v2 = vrot.slane %v1197_v27, 4  ;;  %v1228_v53 = vmul.f32 %v2122_v36, %v1227_v10 }
  0xe7   :  { %v1208_v7 = vsel %vm169_vm1, %v1206_v13, %v1207_v20  ;;  %v1211_v22 = vsel %vm169_vm1, %v1209_v57, %v1210_v42  ;;  %v1229_v28 = vmul.f32 %v2108_v23, %v1227_v10  ;;  %v1230_v63 = vmul.f32 %v2336_v59, %v1227_v10 }
  0xe8   :  { %v1214_v39 = vsel %vm169_vm1, %v1212_v29, %v1213_v55  ;;  %v1222_v21 = vadd.f32 %v1208_v7, %v1184_v17  ;;  %v1217_v33 = vsel %vm169_vm1, %v1215_v30, %v1216_v2  ;;  %v1223_v26 = vadd.f32 %v1211_v22, %v1185_v61 }
  0xe9   :  { %v1224_v41 = vadd.f32 %v1214_v39, %v1186_v6  ;;  %v1225_v35 = vadd.f32 %v1217_v33, %v1187_v12  ;;  %v1231_v52 = vmul.f32 %v2396_v46, %v1227_v10  ;;  %v1237_v32 = vstv %s2372_s27 }
  0xea   :  { %v1232_v17 = vadd.f32 %v1228_v53, %v1222_v21  ;;  %v1233_v3 = vadd.f32 %v1229_v28, %v1223_v26  ;;  %v1238_v6 = vmul.f32 %v2122_v36, %v1237_v32  ;;  %v1239_v14 = vmul.f32 %v2108_v23, %v1237_v32 }
  0xeb   :  { %v1234_v61 = vadd.f32 %v1230_v63, %v1224_v41  ;;  %v1235_v24 = vadd.f32 %v1231_v52, %v1225_v35  ;;  %v1240_v12 = vmul.f32 %v2336_v59, %v1237_v32  ;;  %v1241_v37 = vmul.f32 %v2396_v46, %v1237_v32 }
  0xec   :  { %v1259_v56 = vstv %s2380_s28  ;;  %v1246_v27 = vrot.slane %v1238_v6, 1  ;;  %v1247_v13 = vrot.slane %v1239_v14, 1  ;;  %v2416_v22 = vsel %vm2275_vm13, %v2202_v40, %v947_v44  ;;  %v1614_v6 = vld [vmem:[%s2579_s0 + $0x58] sm:$0x3]  ;;  %s1695_s0 = smov [#allocation7]  }
  0xed   :  { %v1260_v10 = vmul.f32 %v2122_v36, %v1259_v56  ;;  %v1261_v20 = vmul.f32 %v2108_v23, %v1259_v56  ;;  %v1248_v57 = vrot.slane %v1240_v12, 1  ;;  %v1249_v42 = vrot.slane %v1241_v37, 1  ;;  %s1516_s9 = sshll.u32 %s1695_s0, 4  ;;  %s2529_s9 = int_to_ptr.vmem [resolvable:$true] %s1516_s9 }
  0xee   :  { %v1262_v29 = vmul.f32 %v2336_v59, %v1259_v56  ;;  %v1263_v55 = vmul.f32 %v2396_v46, %v1259_v56  ;;  %v1254_v7 = vadd.f32 %v1246_v27, %v1232_v17  ;;  %v1255_v30 = vadd.f32 %v1247_v13, %v1233_v3  ;;  %s1639_s10 = scalar_lea.vmem %s2529_s9, 384  ;;  %p1644_p11 = scmp.lt.s32.totalorder %s2529_s9, %s2529_s9 }
  0xef   :  { %v1268_v2 = vrot.slane %v1260_v10, 2  ;;  %v1269_v53 = vrot.slane %v1261_v20, 2  ;;  %v1256_v39 = vadd.f32 %v1248_v57, %v1234_v61  ;;  %v1257_v21 = vadd.f32 %v1249_v42, %v1235_v24  ;;  %p1640_p10 = scmp.ne.s32.totalorder %s2529_s9, %s1639_s10  ;;  %p1645_p12 = scmp.lt.s32.totalorder %s1639_s10, %s1639_s10 }
  0xf0   :  { %v1270_v28 = vrot.slane %v1262_v29, 2  ;;  %v1271_v33 = vrot.slane %v1263_v55, 2  ;;  %v1281_v63 = vstv %s2391_s29  ;;  %v1319_v32 = vstv %s2400_s6 }
  0xf1   :  { %v1276_v26 = vadd.f32 %v1268_v2, %v1254_v7  ;;  %v1277_v41 = vadd.f32 %v1269_v53, %v1255_v30  ;;  %v1282_v52 = vmul.f32 %v2122_v36, %v1281_v63  ;;  %v1283_v17 = vmul.f32 %v2145_v31, %v1281_v63  ;;  %p1646_p13 = por %p1645_p12, %p1644_p11 }
  0xf2   :  { %v1278_v35 = vadd.f32 %v1270_v28, %v1256_v39  ;;  %v1284_v38 = vmul.f32 %v2108_v23, %v1281_v63  ;;  %v1285_v3 = vmul.f32 %v2153_v4, %v1281_v63  ;;  %v1286_v40 = vmul.f32 %v2336_v59, %v1281_v63 }
  0xf3   :  { %v1287_v44 = vmul.f32 %v2363_v54, %v1281_v63  ;;  %v1288_v61 = vmul.f32 %v2396_v46, %v1281_v63  ;;  %v1289_v14 = vmul.f32 %v1614_v6, %v1281_v63  ;;  %v1298_v24 = vrot.slane %v1282_v52, 3  ;;  %p1647_p0 = pnand %p1646_p13, %p1640_p10 }
  0xf4   :  { %v1299_v12 = vrot.slane %v1283_v17, 3  ;;  %v1301_v37 = vrot.slane %v1284_v38, 3  ;;  %v1302_v56 = vrot.slane %v1285_v3, 3  ;;  %v1304_v27 = vrot.slane %v1286_v40, 3 }
  0xf5   :  { %v1305_v13 = vrot.slane %v1287_v44, 3  ;;  %v1307_v20 = vrot.slane %v1288_v61, 3  ;;  %v1308_v57 = vrot.slane %v1289_v14, 3  ;;  %v1320_v42 = vmul.f32 %v2122_v36, %v1319_v32 }
  0xf6   :  { %v1300_v10 = vsel %vm130_vm0, %v1298_v24, %v1299_v12  ;;  %v1279_v29 = vadd.f32 %v1271_v33, %v1257_v21  ;;  %v1303_v55 = vsel %vm130_vm0, %v1301_v37, %v1302_v56  ;;  %v1321_v30 = vmul.f32 %v2145_v31, %v1319_v32 }
  0xf7   :  { %v1306_v7 = vsel %vm130_vm0, %v1304_v27, %v1305_v13  ;;  %v1309_v2 = vsel %vm130_vm0, %v1307_v20, %v1308_v57  ;;  %v1314_v53 = vadd.f32 %v1300_v10, %v1276_v26  ;;  %v1315_v39 = vadd.f32 %v1303_v55, %v1277_v41 }
  0xf8   :  { %v1322_v28 = vmul.f32 %v2108_v23, %v1319_v32  ;;  %v1316_v63 = vadd.f32 %v1306_v7, %v1278_v35  ;;  %v1323_v52 = vmul.f32 %v2153_v4, %v1319_v32  ;;  %v1324_v17 = vmul.f32 %v2336_v59, %v1319_v32 }
  0xf9   :  { %v1325_v36 = vmul.f32 %v2363_v54, %v1319_v32  ;;  %v1326_v21 = vmul.f32 %v2396_v46, %v1319_v32  ;;  %v1327_v33 = vmul.f32 %v1614_v6, %v1319_v32  ;;  %v1336_v38 = vrot.slane %v1320_v42, 4 }
  0xfa   :  { %v1337_v3 = vrot.slane %v1321_v30, 4  ;;  %v1339_v40 = vrot.slane %v1322_v28, 4  ;;  %v1340_v31 = vrot.slane %v1323_v52, 4  ;;  %v1342_v44 = vrot.slane %v1324_v17, 4 }
  0xfb   :  { %v1343_v61 = vrot.slane %v1325_v36, 4  ;;  %v1317_v26 = vadd.f32 %v1309_v2, %v1279_v29  ;;  %v1345_v23 = vrot.slane %v1326_v21, 4  ;;  %v1346_v35 = vrot.slane %v1327_v33, 4 }
  0xfc   :  { %v1338_v41 = vsel %vm169_vm1, %v1336_v38, %v1337_v3  ;;  %v2446_v4 = vsel %vm2275_vm13, 21, %v956_v49  ;;  %v1341_v59 = vsel %vm169_vm1, %v1339_v40, %v1340_v31  ;;  %v2454_v32 = vsel %vm2275_vm13, 23, %v961_v51 }
  0xfd   :  { %v1344_v54 = vsel %vm169_vm1, %v1342_v44, %v1343_v61  ;;  %v1352_v46 = vadd.f32 %v1338_v41, %v1314_v53  ;;  %v1347_v6 = vsel %vm169_vm1, %v1345_v23, %v1346_v35  ;;  %v1417_v43 = vrot.slane %v1992_v50, 1 }
  0xfe   :  { %v1354_v14 = vadd.f32 %v1344_v54, %v1316_v63  ;;  %v1353_v24 = vadd.f32 %v1341_v59, %v1315_v39  ;;  %v1419_v49 = vrot.slane %v1992_v50, 2  ;;  %v1421_v37 = vrot.slane %v1992_v50, 3 }
  0xff   :  { %v1357_v12 = vrot.slane %v1352_v46, 7  ;;  %v2460_v56 = vadd.f32 %v1347_v6, %v1317_v26  ;;  %v1424_v11 = vrot.slane %v2138_v1, 6  ;;  %v1426_v0 = vrot.slane %v2138_v1, 7 }
 0x100   :  { %v1387_v27 = vrot.slane %v1354_v14, 7  ;;  %v1429_v51 = vrot.slane %v2259_v15, 3  ;;  %v1431_v13 = vrot.slane %v2259_v15, 4  ;;  %v1433_v2 = vrot.slane %v2259_v15, 5 }
 0x101   :  { %vm1359_vm14 = vcmp.gt.f32.partialorder %v1352_v46, %v1357_v12  ;;  %v1451_v53 = vsel %vm1450_vm15, %v1417_v43, %v1419_v49  ;;  %vm1452_vm3 = vcmask 1041408   ;;  %v2601_v44 = vmov 16  }
 0x102   :  { %v1360_v10 = vsel %vm1359_vm14, 1, %v1689_v62  ;;  %v1361_v20 = vsel %vm1359_vm14, %v1352_v46, %v1357_v12  ;;  %v1376_v57 = vsel %vm1359_vm14, 3, %v1690_v5  ;;  %v1381_v50 = vsel %vm1359_vm14, 5, %v1691_v8 }
 0x103   :  { %v1363_v42 = vrot.slane %v1361_v20, 1  ;;  %v1366_v29 = vrot.slane %v1360_v10, 1  ;;  %v1377_v55 = vrot.slane %v1376_v57, 1  ;;  %v1382_v7 = vrot.slane %v1381_v50, 1 }
 0x104   :  { %vm2469_vm2 = vcmp.gt.f32.partialorder %v1354_v14, %v1387_v27  ;;  %v2600_v8 = vmov 14   ;;  %v1436_v26 = vrot.slane %v2416_v22, 1  ;;  %v1438_v41 = vrot.slane %v2416_v22, 2 }
 0x105   :  { %vm1365_vm4 = vcmp.gt.f32.partialorder %v1353_v24, %v1363_v42  ;;  %v1390_v62 = vsel %vm2469_vm2, 13, %v1692_v18  ;;  %v1391_v5 = vsel %vm2469_vm2, %v1354_v14, %v1387_v27  ;;  %v1406_v39 = vsel %vm2469_vm2, 15, %v2600_v8 }
 0x106   :  { %v1367_v28 = vsel %vm1365_vm4, 6, %v1366_v29  ;;  %v1368_v63 = vsel %vm1365_vm4, %v1353_v24, %v1363_v42  ;;  %v1378_v52 = vsel %vm1365_vm4, 8, %v1377_v55  ;;  %v1383_v17 = vsel %vm1365_vm4, 10, %v1382_v7 }
 0x107   :  { %v1370_v36 = vrot.slane %v1368_v63, 7  ;;  %v1373_v21 = vrot.slane %v1367_v28, 7  ;;  %v1379_v33 = vrot.slane %v1378_v52, 7  ;;  %v1384_v38 = vrot.slane %v1383_v17, 7 }
 0x108   :  { %v1393_v3 = vrot.slane %v1391_v5, 1  ;;  %v1396_v40 = vrot.slane %v1390_v62, 1  ;;  %v1407_v31 = vrot.slane %v1406_v39, 1  ;;  %v1411_v18 = vsel %vm2469_vm2, 17, %v2601_v44 }
 0x109   :  { %vm1372_vm5 = vcmp.gt.f32.partialorder %v1353_v24, %v1370_v36  ;;  %v1412_v61 = vrot.slane %v1411_v18, 1  ;;  %v1453_v35 = vsel %vm1452_vm3, %v1451_v53, %v1421_v37  ;;  %vm1454_vm6 = vcmask 1042432  }
 0x10a   :  { %v1375_v23 = vsel %vm1372_vm5, %v1353_v24, %v1370_v36  ;;  %vm1458_vm7 = vcmask 1045504   ;;  %v2489_v59 = vsel %vm1372_vm5, 7, %v1373_v21  ;;  %v2491_v54 = vsel %vm1372_vm5, 9, %v1379_v33 }
 0x10b   :  { %v2493_v46 = vsel %vm1372_vm5, 11, %v1384_v38  ;;  %vm1395_vm8 = vcmp.gt.f32.partialorder %v2460_v56, %v1393_v3  ;;  %v1441_v27 = vrot.slane %v1375_v23, 5  ;;  %v1443_v24 = vrot.slane %v1375_v23, 6 }
 0x10c   :  { %v1397_v6 = vsel %vm1395_vm8, 18, %v1396_v40  ;;  %v1398_v14 = vsel %vm1395_vm8, %v2460_v56, %v1393_v3  ;;  %v1408_v43 = vsel %vm1395_vm8, 20, %v1407_v31  ;;  %v1413_v12 = vsel %vm1395_vm8, 22, %v1412_v61 }
 0x10d   :  { %v1400_v49 = vrot.slane %v1398_v14, 7  ;;  %v1445_v10 = vrot.slane %v1375_v23, 7  ;;  %v1403_v37 = vrot.slane %v1397_v6, 7  ;;  %v1409_v20 = vrot.slane %v1408_v43, 7 }
 0x10e   :  { %v1455_v57 = vsel %vm1454_vm6, %v1453_v35, %v1424_v11  ;;  %v1462_v50 = vsel %vm1450_vm15, %v1433_v2, %v2416_v22  ;;  %v1414_v29 = vrot.slane %v1413_v12, 7  ;;  %vm1460_vm10 = vcmask 1046528  }
 0x10f   :  { %vm2501_vm9 = vcmp.gt.f32.partialorder %v2460_v56, %v1400_v49  ;;  %v1456_v55 = vsel %vm169_vm1, %v1455_v57, %v1426_v0  ;;  %v1463_v7 = vsel %vm1452_vm3, %v1462_v50, %v1436_v26  ;;  %v1477_v11 = vrot.slane %v1979_v45, 1 }
 0x110   :  { %v1405_v30 = vsel %vm2501_vm9, %v2460_v56, %v1400_v49  ;;  %v1478_v53 = vrot.slane %v1996_v58, 2  ;;  %v1457_v2 = vsel %vm130_vm0, %v1456_v55, %v2138_v1  ;;  %v1464_v62 = vsel %vm1454_vm6, %v1463_v7, %v1438_v41 }
 0x111   :  { %v1448_v22 = vrot.slane %v1405_v30, 2  ;;  %v1469_v0 = vrot.slane %v1405_v30, 3  ;;  %v1404_v5 = vsel %vm2501_vm9, 19, %v1403_v37  ;;  %v1459_v56 = vsel %vm1458_vm7, %v1457_v2, %v1429_v51 }
 0x112   :  { %v1465_v45 = vsel %vm169_vm1, %v1464_v62, %v1441_v27  ;;  %v1471_v8 = vrot.slane %v1405_v30, 4  ;;  %v1410_v58 = vsel %vm2501_vm9, 21, %v1409_v20  ;;  %v1415_v39 = vsel %vm2501_vm9, 23, %v1414_v29 }
 0x113   :  { %v1461_v1 = vsel %vm1460_vm10, %v1459_v56, %v1431_v13  ;;  %v1466_v28 = vsel %vm130_vm0, %v1465_v45, %v1443_v24  ;;  %v1479_v52 = vrot.slane %v2001_v9, 3  ;;  %v1480_v17 = vrot.slane %v2016_v19, 6 }
 0x114   :  { %v1467_v63 = vsel %vm1458_vm7, %v1466_v28, %v1445_v10  ;;  %v1473_v51 = vsel %vm1450_vm15, %v1469_v0, %v1471_v8  ;;  %1474 = vst [vmem:[#allocation7] sm:$0xff] %v1461_v1  ;;  %v1484_v15 = vrot.slane %v2268_v48, 5  ;;  %v1485_v13 = vrot.slane %v2446_v4, 1 }
 0x115   :  { %v1468_v36 = vsel %vm1460_vm10, %v1467_v63, %v1448_v22  ;;  %1476 = vst [vmem:[#allocation7 + $0x10] sm:$0x3] %v1473_v51  ;;  %v1486_v21 = vrot.slane %v2454_v32, 2  ;;  %v1481_v33 = vrot.slane %v2194_v34, 7  ;;  %v1482_v38 = vrot.slane %v2247_v47, 3 }
 0x116   :  { %1475 = vst [vmem:[#allocation7 + $0x8] sm:$0xff] %v1468_v36  ;;  %v1487_v9 = vrot.slane %v2489_v59, 5  ;;  %v1488_v19 = vrot.slane %v2491_v54, 6  ;;  %v1491_v3 = vsel %vm1450_vm15, %v1477_v11, %v1478_v53  ;;  %v1498_v40 = vsel %vm1450_vm15, %v1484_v15, %v2283_v25 }
 0x117   :  { %v1505_v31 = vrot.slane %v1410_v58, 3  ;;  %v1506_v48 = vrot.slane %v1415_v39, 4 }
 0x118   :  { %1650 = shalt.err (!%p1647_p0)
}
 0x119   :  { %s1696_s11 = smov 128   ;;  %s1697_s12 = smov 8   ;;  %v1483_v34 = vrot.slane %v2263_v60, 4  ;;  %v1489_v47 = vrot.slane %v2493_v46, 7  ;;  %v1492_v25 = vsel %vm1452_vm3, %v1491_v3, %v1479_v52  ;;  %v1499_v4 = vsel %vm1452_vm3, %v1498_v40, %v1485_v13 }
 0x11a   :  { %1522 = dma.vmem_to_hbm [thread:$0]  %s2529_s9, 384, %s2582_s3, [#allocation3], %s1696_s11, %s1696_s11, %s1697_s12   ;;  %v1490_v32 = vrot.slane %v1404_v5, 2  ;;  %v1493_v44 = vsel %vm1454_vm6, %v1492_v25, %v1480_v17  ;;  %v1500_v18 = vsel %vm1454_vm6, %v1499_v4, %v1486_v21  ;;  %v1507_v61 = vsel %vm1450_vm15, %v1505_v31, %v1506_v48 }
 0x11b   :  { %s1698_s15 = smov [#allocation8]   ;;  %v1494_v26 = vsel %vm169_vm1, %v1493_v44, %v1481_v33  ;;  %v1501_v41 = vsel %vm169_vm1, %v1500_v18, %v1487_v9  ;;  %1510 = vst [vmem:[#allocation8 + $0x10] sm:$0x3] %v1507_v61 }
 0x11c   :  { %s1528_s16 = sshll.u32 %s1698_s15, 4  ;;  %v1495_v60 = vsel %vm130_vm0, %v1494_v26, %v2200_v16  ;;  %v1502_v23 = vsel %vm130_vm0, %v1501_v41, %v1488_v19  ;;  %s1529_s16 = int_to_ptr.vmem [resolvable:$true] %s1528_s16 }
 0x11d   :  { %v1496_v35 = vsel %vm1458_vm7, %v1495_v60, %v1482_v38  ;;  %v1503_v59 = vsel %vm1458_vm7, %v1502_v23, %v1489_v47  ;;  %s1659_s3 = scalar_lea.vmem %s1529_s16, 384  ;;  %p1664_p2 = scmp.lt.s32.totalorder %s1529_s16, %s1529_s16 }
 0x11e   :  { %v1497_v54 = vsel %vm1460_vm10, %v1496_v35, %v1483_v34  ;;  %v1504_v46 = vsel %vm1460_vm10, %v1503_v59, %v1490_v32  ;;  %p1660_p1 = scmp.ne.s32.totalorder %s1529_s16, %s1659_s3  ;;  %p1665_p3 = scmp.lt.s32.totalorder %s1659_s3, %s1659_s3 }
 0x11f   :  { %1508 = vst [vmem:[#allocation8] sm:$0xff] %v1497_v54  ;;  %1509 = vst [vmem:[#allocation8 + $0x8] sm:$0xff] %v1504_v46 }
 0x120   :  { %p1666_p4 = por %p1665_p3, %p1664_p2 }
 0x122   :  { %p1667_p5 = pnand %p1666_p4, %p1660_p1 }
 0x124   :  { %1670 = shalt.err (!%p1667_p5)
}
 0x125   :  { %1534 = dma.vmem_to_hbm [thread:$0]  %s1529_s16, 384, %s2583_s4, [#allocation9], %s1696_s11, %s1696_s11, %s1697_s12  }
 0x126   :  { %1683 = dma.done.wait [#allocation3], 384  }
 0x127   :  { %1684 = vsyncadd [#allocation3], 4294966912 }
 0x128   :  { %1685 = dma.done.wait [#allocation9], 384  }
 0x129   :  { %1686 = vsyncadd [#allocation9], 4294966912 }
 0x12a   :  { %1541 = vsyncpa [#allocation3], 1 }
 0x12b   :  { %1542 = vsyncpa [#allocation9], 1 }
 0x12c   :  { %1543 = vsyncpa [#allocation4], 1 }
 0x12d   :  { %1544 = vsyncpa [#allocation6], 1 }

</bundles_post_ra>
